<compile_context>
chip_gen: v5e
topology: v5e:2x2
jax: 0.10.0
libtpu: 0.0.40
codegen_flags: <defaults>
</compile_context>

<pallas_src>
import functools

import jax
import jax.numpy as jnp
from jax.experimental import pallas as pl
from jax.experimental.pallas import tpu as pltpu

NUM_CLASSES = 3
OUT_PAD = 128  # lane-dense padded class dimension


def _round_up(x, m):
    return ((x + m - 1) // m) * m


# ----------------------------------------------------------------------------
# Pallas kernel: fc1 -> sigmoid -> fc2 -> sigmoid -> fc3 -> log_softmax(dim=1)
# Operates on one batch tile [TB, 768]; weights are VMEM-resident.
# ----------------------------------------------------------------------------
def bert_head_kernel(cls_ref, w1_ref, b1_ref, w2_ref, b2_ref, w3_ref, b3_ref,
                     out_ref):
    x = cls_ref[...]                                            # [TB, 768] bf16

    # fc1 + sigmoid (f32 accumulate, bf16 MXU inputs)
    h1 = jnp.dot(x, w1_ref[...], preferred_element_type=jnp.float32)
    h1 = jax.nn.sigmoid(h1 + b1_ref[...])                       # [TB, 512] f32

    # fc2 + sigmoid
    h2 = jnp.dot(h1.astype(jnp.bfloat16), w2_ref[...],
                 preferred_element_type=jnp.float32)
    h2 = jax.nn.sigmoid(h2 + b2_ref[...])                       # [TB, 256] f32

    # fc3 (output padded to 128 lanes)
    logits = jnp.dot(h2.astype(jnp.bfloat16), w3_ref[...],
                     preferred_element_type=jnp.float32)
    logits = logits + b3_ref[...]                               # [TB, 128] f32

    # Mask padded lanes out of the softmax reductions.
    lane = jax.lax.broadcasted_iota(jnp.int32, logits.shape, 1)
    logits = jnp.where(lane < NUM_CLASSES, logits, jnp.float32(-1e30))

    # Numerically-stable LogSoftmax over the class dimension.
    m = jnp.max(logits, axis=-1, keepdims=True)
    shifted = logits - m
    lse = jnp.log(jnp.sum(jnp.exp(shifted), axis=-1, keepdims=True))
    out_ref[...] = shifted - lse


# ----------------------------------------------------------------------------
# Wrapper: batch-tiled grid, resident weights, lane-dense padded output.
# ----------------------------------------------------------------------------
def bert_arch_head(cls_hs, params, *, block_b=256):
    B, H = cls_hs.shape
    assert H == 768
    w1, b1, w2, b2, w3p, b3p = params  # w3p/b3p pre-padded to 128 out lanes

    cls_hs = cls_hs.astype(jnp.bfloat16)

    # Tile size: multiple of 8 sublanes, capped at block_b (256 on v6e/v7x).
    TB = min(block_b, _round_up(B, 8))
    Bp = _round_up(B, TB)
    if Bp != B:
        cls_hs = jnp.pad(cls_hs, ((0, Bp - B), (0, 0)))

    grid = (Bp // TB,)

    act_spec = pl.BlockSpec((TB, 768), lambda i: (i, 0))
    out_spec = pl.BlockSpec((TB, OUT_PAD), lambda i: (i, 0))
    # Weights/biases: same block every step -> stay resident in VMEM.
    w1_spec = pl.BlockSpec((768, 512), lambda i: (0, 0))
    b1_spec = pl.BlockSpec((1, 512), lambda i: (0, 0))
    w2_spec = pl.BlockSpec((512, 256), lambda i: (0, 0))
    b2_spec = pl.BlockSpec((1, 256), lambda i: (0, 0))
    w3_spec = pl.BlockSpec((256, OUT_PAD), lambda i: (0, 0))
    b3_spec = pl.BlockSpec((1, OUT_PAD), lambda i: (0, 0))

    out_padded = pl.pallas_call(
        bert_head_kernel,
        out_shape=jax.ShapeDtypeStruct((Bp, OUT_PAD), jnp.float32),
        grid=grid,
        in_specs=[act_spec, w1_spec, b1_spec, w2_spec, b2_spec,
                  w3_spec, b3_spec],
        out_specs=out_spec,
        compiler_params=pltpu.CompilerParams(
            dimension_semantics=("parallel",)),
    )(cls_hs, w1, b1, w2, b2, w3p, b3p)

    return out_padded[:B, :NUM_CLASSES]


# ----------------------------------------------------------------------------
# Deterministic parameter init (shapes from Bert_Arch.__init__).
# Weights stored [in, out] (transposed nn.Linear), bf16; fc3 padded to 128.
# ----------------------------------------------------------------------------
def init_params(key):
    ks = jax.random.split(key, 6)
    w1 = (jax.random.normal(ks[0], (768, 512), jnp.float32) * 0.02
          ).astype(jnp.bfloat16)
    b1 = jax.random.normal(ks[1], (1, 512), jnp.float32) * 0.02
    w2 = (jax.random.normal(ks[2], (512, 256), jnp.float32) * 0.02
          ).astype(jnp.bfloat16)
    b2 = jax.random.normal(ks[3], (1, 256), jnp.float32) * 0.02
    w3 = jax.random.normal(ks[4], (256, NUM_CLASSES), jnp.float32) * 0.02
    b3 = jax.random.normal(ks[5], (1, NUM_CLASSES), jnp.float32) * 0.02
    # Pad fc3 to a lane-dense 128-wide output (zero columns, masked in-kernel).
    w3p = jnp.zeros((256, OUT_PAD), jnp.bfloat16).at[:, :NUM_CLASSES].set(
        w3.astype(jnp.bfloat16))
    b3p = jnp.zeros((1, OUT_PAD), jnp.float32).at[:, :NUM_CLASSES].set(b3)
    return (w1, b1, w2, b2, w3p, b3p)


# ----------------------------------------------------------------------------
# Deterministic BERT stub: embedding + masked mean + tanh, fused in the same
# jit as the Pallas head so the pooled [B,768] never round-trips HBM twice.
# TODO(synk): full BERT encoder (self.bert) is an external module; only its
# pooled CLS output is emulated here.
# ----------------------------------------------------------------------------
def bert_stub(sent_id, mask, emb):
    tok = emb[sent_id]                                          # [B, S, H]
    m = mask.astype(jnp.float32)[..., None]                     # [B, S, 1]
    pooled = jnp.sum(tok * m, axis=1) / jnp.maximum(jnp.sum(m, axis=1), 1.0)
    return jnp.tanh(pooled)                                     # [B, 768]


@functools.partial(jax.jit, static_argnames=("block_b",))
def bert_arch_forward(sent_id, mask, emb, params, *, block_b=256):
    cls_hs = bert_stub(sent_id, mask, emb)
    return bert_arch_head(cls_hs, params, block_b=block_b)


# ----------------------------------------------------------------------------
# Pure-JAX reference (same bf16 params) for correctness check.
# ----------------------------------------------------------------------------
def reference_head(cls_hs, params):
    w1, b1, w2, b2, w3p, b3p = params
    x = cls_hs.astype(jnp.bfloat16)
    h1 = jax.nn.sigmoid(
        jnp.dot(x, w1, preferred_element_type=jnp.float32) + b1)
    h2 = jax.nn.sigmoid(
        jnp.dot(h1.astype(jnp.bfloat16), w2,
                preferred_element_type=jnp.float32) + b2)
    logits = (jnp.dot(h2.astype(jnp.bfloat16), w3p,
                      preferred_element_type=jnp.float32)
              + b3p)[:, :NUM_CLASSES]
    return jax.nn.log_softmax(logits, axis=-1)


if __name__ == "__main__":
    key = jax.random.PRNGKey(0)
    k_params, k_emb, k_ids, k_mask = jax.random.split(key, 4)

    B, S, VOCAB = 8, 16, 100
    sent_id = jax.random.randint(k_ids, (B, S), 0, VOCAB, dtype=jnp.int32)
    mask = (jax.random.uniform(k_mask, (B, S)) > 0.2).astype(jnp.int32)
    emb = jax.random.normal(k_emb, (VOCAB, 768), jnp.float32) * 0.02

    params = init_params(k_params)

    out = bert_arch_forward(sent_id, mask, emb, params)          # [8, 3]
    out = jax.block_until_ready(out)

    # Sanity: shape, rows sum to ~1 in prob space, matches JAX reference.
    assert out.shape == (B, NUM_CLASSES)
    probs_sum = jnp.sum(jnp.exp(out), axis=-1)
    assert bool(jnp.all(jnp.abs(probs_sum - 1.0) < 1e-4))

    ref = reference_head(bert_stub(sent_id, mask, emb), params)
    assert bool(jnp.all(jnp.abs(out - ref) < 5e-2))

    print("KERNEL_OK")
</pallas_src>

<mosaic_0001>
module attributes {stable_mosaic.version = 11 : i64} {
  func.func @bert_head_kernel(%arg0: i32, %arg1: memref<8x768xbf16, #tpu.memory_space<vmem>>, %arg2: memref<768x512xbf16, #tpu.memory_space<vmem>>, %arg3: memref<1x512xf32, #tpu.memory_space<vmem>>, %arg4: memref<512x256xbf16, #tpu.memory_space<vmem>>, %arg5: memref<1x256xf32, #tpu.memory_space<vmem>>, %arg6: memref<256x128xbf16, #tpu.memory_space<vmem>>, %arg7: memref<1x128xf32, #tpu.memory_space<vmem>>, %arg8: memref<8x128xf32, #tpu.memory_space<vmem>>) attributes {dimension_semantics = [#tpu.dimension_semantics<parallel>], iteration_bounds = array<i64: 1>, scalar_prefetch = 0 : i64, scratch_operands = 0 : i64, tpu.core_type = #tpu.core_type<tc>, window_params = [{transform_indices = @transform_0, window_bounds = array<i64: 8, 768>}, {pipeline_mode = #tpu.pipeline_mode<synchronous>, transform_indices = @transform_1, window_bounds = array<i64: 768, 512>}, {pipeline_mode = #tpu.pipeline_mode<synchronous>, transform_indices = @transform_2, window_bounds = array<i64: 1, 512>}, {pipeline_mode = #tpu.pipeline_mode<synchronous>, transform_indices = @transform_3, window_bounds = array<i64: 512, 256>}, {pipeline_mode = #tpu.pipeline_mode<synchronous>, transform_indices = @transform_4, window_bounds = array<i64: 1, 256>}, {pipeline_mode = #tpu.pipeline_mode<synchronous>, transform_indices = @transform_5, window_bounds = array<i64: 256, 128>}, {pipeline_mode = #tpu.pipeline_mode<synchronous>, transform_indices = @transform_6, window_bounds = array<i64: 1, 128>}, {transform_indices = @transform_7, window_bounds = array<i64: 8, 128>}]} {
    %c0 = arith.constant 0 : index
    %c0_0 = arith.constant 0 : index
    %0 = vector.load %arg1[%c0, %c0_0] : memref<8x768xbf16, #tpu.memory_space<vmem>>, vector<8x768xbf16>
    %c0_1 = arith.constant 0 : index
    %c0_2 = arith.constant 0 : index
    %1 = vector.load %arg2[%c0_1, %c0_2] : memref<768x512xbf16, #tpu.memory_space<vmem>>, vector<768x512xbf16>
    %cst = arith.constant dense<0.000000e+00> : vector<8x512xf32>
    %2 = tpu.matmul %0, %1, %cst {dimension_numbers = #tpu.dot_dimension_numbers<[1], [0], [0], [1], [0, 0, 1, 1], [], []>} : vector<8x768xbf16>, vector<768x512xbf16>, vector<8x512xf32> -> vector<8x512xf32>
    %c0_3 = arith.constant 0 : index
    %c0_4 = arith.constant 0 : index
    %3 = vector.load %arg3[%c0_3, %c0_4] : memref<1x512xf32, #tpu.memory_space<vmem>>, vector<1x512xf32>
    %4 = vector.broadcast %3 : vector<1x512xf32> to vector<8x512xf32>
    %5 = arith.addf %2, %4 : vector<8x512xf32>
    %6 = arith.negf %5 : vector<8x512xf32>
    %7 = math.exp %6 : vector<8x512xf32>
    %cst_5 = arith.constant 1.000000e+00 : f32
    %8 = vector.broadcast %cst_5 : f32 to vector<8x512xf32>
    %9 = arith.addf %8, %7 : vector<8x512xf32>
    %10 = arith.divf %8, %9 : vector<8x512xf32>
    %11 = arith.truncf %10 : vector<8x512xf32> to vector<8x512xbf16>
    %c0_6 = arith.constant 0 : index
    %c0_7 = arith.constant 0 : index
    %12 = vector.load %arg4[%c0_6, %c0_7] : memref<512x256xbf16, #tpu.memory_space<vmem>>, vector<512x256xbf16>
    %cst_8 = arith.constant dense<0.000000e+00> : vector<8x256xf32>
    %13 = tpu.matmul %11, %12, %cst_8 {dimension_numbers = #tpu.dot_dimension_numbers<[1], [0], [0], [1], [0, 0, 1, 1], [], []>} : vector<8x512xbf16>, vector<512x256xbf16>, vector<8x256xf32> -> vector<8x256xf32>
    %c0_9 = arith.constant 0 : index
    %c0_10 = arith.constant 0 : index
    %14 = vector.load %arg5[%c0_9, %c0_10] : memref<1x256xf32, #tpu.memory_space<vmem>>, vector<1x256xf32>
    %15 = vector.broadcast %14 : vector<1x256xf32> to vector<8x256xf32>
    %16 = arith.addf %13, %15 : vector<8x256xf32>
    %17 = arith.negf %16 : vector<8x256xf32>
    %18 = math.exp %17 : vector<8x256xf32>
    %cst_11 = arith.constant 1.000000e+00 : f32
    %19 = vector.broadcast %cst_11 : f32 to vector<8x256xf32>
    %20 = arith.addf %19, %18 : vector<8x256xf32>
    %21 = arith.divf %19, %20 : vector<8x256xf32>
    %22 = arith.truncf %21 : vector<8x256xf32> to vector<8x256xbf16>
    %c0_12 = arith.constant 0 : index
    %c0_13 = arith.constant 0 : index
    %23 = vector.load %arg6[%c0_12, %c0_13] : memref<256x128xbf16, #tpu.memory_space<vmem>>, vector<256x128xbf16>
    %cst_14 = arith.constant dense<0.000000e+00> : vector<8x128xf32>
    %24 = tpu.matmul %22, %23, %cst_14 {dimension_numbers = #tpu.dot_dimension_numbers<[1], [0], [0], [1], [0, 0, 1, 1], [], []>} : vector<8x256xbf16>, vector<256x128xbf16>, vector<8x128xf32> -> vector<8x128xf32>
    %c0_15 = arith.constant 0 : index
    %c0_16 = arith.constant 0 : index
    %25 = vector.load %arg7[%c0_15, %c0_16] : memref<1x128xf32, #tpu.memory_space<vmem>>, vector<1x128xf32>
    %26 = vector.broadcast %25 : vector<1x128xf32> to vector<8x128xf32>
    %27 = arith.addf %24, %26 : vector<8x128xf32>
    %28 = tpu.iota {dimensions = array<i32: 1>} : vector<8x128xi32>
    %c3_i32 = arith.constant 3 : i32
    %29 = vector.broadcast %c3_i32 : i32 to vector<8x128xi32>
    %30 = arith.cmpi slt, %28, %29 : vector<8x128xi32>
    %cst_17 = arith.constant -1.000000e+30 : f32
    %31 = vector.broadcast %cst_17 : f32 to vector<8x128xf32>
    %32 = arith.select %30, %27, %31 : vector<8x128xi1>, vector<8x128xf32>
    %cst_18 = arith.constant dense<0xFF800000> : vector<8xf32>
    %33 = vector.multi_reduction <maximumf>, %32, %cst_18 [1] : vector<8x128xf32> to vector<8xf32>
    %34 = vector.shape_cast %33 : vector<8xf32> to vector<8x1xf32>
    %35 = vector.broadcast %34 : vector<8x1xf32> to vector<8x128xf32>
    %36 = arith.subf %32, %35 : vector<8x128xf32>
    %37 = math.exp %36 : vector<8x128xf32>
    %cst_19 = arith.constant dense<0.000000e+00> : vector<8xf32>
    %38 = vector.multi_reduction <add>, %37, %cst_19 [1] : vector<8x128xf32> to vector<8xf32>
    %39 = vector.shape_cast %38 : vector<8xf32> to vector<8x1xf32>
    %40 = math.log %39 : vector<8x1xf32>
    %41 = vector.broadcast %40 : vector<8x1xf32> to vector<8x128xf32>
    %42 = arith.subf %36, %41 : vector<8x128xf32>
    %c0_20 = arith.constant 0 : index
    %c0_21 = arith.constant 0 : index
    %43 = vector.load %arg8[%c0_20, %c0_21] : memref<8x128xf32, #tpu.memory_space<vmem>>, vector<8x128xf32>
    tpu.vector_store %arg8[%c0_20, %c0_21], %42 {strides = array<i32>} : memref<8x128xf32, #tpu.memory_space<vmem>>, vector<8x128xf32>,
    return
  }
  func.func @transform_0(%arg0: i32) -> (i32, i32) {
    %c0_i32 = arith.constant 0 : i32
    %c0_i32_0 = arith.constant 0 : i32
    return %arg0, %c0_i32 : i32, i32
  }
  func.func @transform_1(%arg0: i32) -> (i32, i32) {
    %c0_i32 = arith.constant 0 : i32
    %c0_i32_0 = arith.constant 0 : i32
    %c0_i32_1 = arith.constant 0 : i32
    return %c0_i32, %c0_i32_0 : i32, i32
  }
  func.func @transform_2(%arg0: i32) -> (i32, i32) {
    %c0_i32 = arith.constant 0 : i32
    %c0_i32_0 = arith.constant 0 : i32
    %c0_i32_1 = arith.constant 0 : i32
    return %c0_i32, %c0_i32_0 : i32, i32
  }
  func.func @transform_3(%arg0: i32) -> (i32, i32) {
    %c0_i32 = arith.constant 0 : i32
    %c0_i32_0 = arith.constant 0 : i32
    %c0_i32_1 = arith.constant 0 : i32
    return %c0_i32, %c0_i32_0 : i32, i32
  }
  func.func @transform_4(%arg0: i32) -> (i32, i32) {
    %c0_i32 = arith.constant 0 : i32
    %c0_i32_0 = arith.constant 0 : i32
    %c0_i32_1 = arith.constant 0 : i32
    return %c0_i32, %c0_i32_0 : i32, i32
  }
  func.func @transform_5(%arg0: i32) -> (i32, i32) {
    %c0_i32 = arith.constant 0 : i32
    %c0_i32_0 = arith.constant 0 : i32
    %c0_i32_1 = arith.constant 0 : i32
    return %c0_i32, %c0_i32_0 : i32, i32
  }
  func.func @transform_6(%arg0: i32) -> (i32, i32) {
    %c0_i32 = arith.constant 0 : i32
    %c0_i32_0 = arith.constant 0 : i32
    %c0_i32_1 = arith.constant 0 : i32
    return %c0_i32, %c0_i32_0 : i32, i32
  }
  func.func @transform_7(%arg0: i32) -> (i32, i32) {
    %c0_i32 = arith.constant 0 : i32
    %c0_i32_0 = arith.constant 0 : i32
    return %arg0, %c0_i32 : i32, i32
  }
}

</mosaic_0001>

<bundles_post_ra>
// kernel: bert_arch_forward.1
= control target key start
LH: loop header
LB: loop body
LE: loop exit
PB: predicated region body
PF: predicated region fallthrough
CT: control target
= control target key end

     0   :  { %s5411_s1 = inlined_call_operand.vmem [shape: bf16[768,512], index: 1, kind: input, shape index: {}]   ;;  %s5412_s0 = inlined_call_operand.vmem [shape: bf16[8,768], index: 0, kind: input, shape index: {}]   ;;  %s5413_s2 = inlined_call_operand.vmem [shape: f32[1,512], index: 2, kind: input, shape index: {}]   ;;  %s5414_s3 = inlined_call_operand.vmem [shape: bf16[512,256], index: 3, kind: input, shape index: {}]   ;;  %s5415_s4 = inlined_call_operand.vmem [shape: f32[1,256], index: 4, kind: input, shape index: {}]   ;;  %s5416_s6 = inlined_call_operand.vmem [shape: f32[1,128], index: 6, kind: input, shape index: {}]   ;;  %s5417_s5 = inlined_call_operand.vmem [shape: bf16[256,128], index: 5, kind: input, shape index: {}]   ;;  %s5418_s7 = inlined_call_operand.vmem [shape: f32[8,128], index: 7, kind: output, shape index: {}]  }
   0x1   :  { %v2429_v0 = vld [vmem:[%s5411_s1 + $0xe0] sm:$0xf]  ;;  %v3439_v1 = vld [vmem:[%s5411_s1 + $0xec] sm:$0xf0] }
   0x2   :  { %v2557_v2 = vld [vmem:[%s5411_s1 + $0x1e0] sm:$0xf]  ;;  %v2430_v3 = vor.u32 %v3439_v1, %v2429_v0  ;;  %v3471_v4 = vld [vmem:[%s5411_s1 + $0x1ec] sm:$0xf0] }
   0x3   :  { %v2685_v5 = vld [vmem:[%s5411_s1 + $0x2e0] sm:$0xf]  ;;  %v3503_v6 = vld [vmem:[%s5411_s1 + $0x2ec] sm:$0xf0]  ;;  %v2558_v7 = vor.u32 %v3471_v4, %v2557_v2 }
   0x4   :  { %v2686_v8 = vor.u32 %v3503_v6, %v2685_v5  ;;  %v2813_v9 = vld [vmem:[%s5411_s1 + $0x3e0] sm:$0xf]  ;;  %v3535_v10 = vld [vmem:[%s5411_s1 + $0x3ec] sm:$0xf0]  ;;  %1212 = vmatpush.bf16.msra.mxu0 %v2430_v3 }
   0x5   :  { %v2413_v11 = vld [vmem:[%s5411_s1 + $0xc0] sm:$0xf]  ;;  %v2814_v12 = vor.u32 %v3535_v10, %v2813_v9  ;;  %v3435_v13 = vld [vmem:[%s5411_s1 + $0xcc] sm:$0xf0]  ;;  %1225 = vmatpush.bf16.msra.mxu1 %v2558_v7 }
   0x6   :  { %v2541_v14 = vld [vmem:[%s5411_s1 + $0x1c0] sm:$0xf]  ;;  %v3467_v15 = vld [vmem:[%s5411_s1 + $0x1cc] sm:$0xf0]  ;;  %1238 = vmatpush.bf16.msra.mxu2 %v2686_v8  ;;  %v2414_v16 = vor.u32 %v3435_v13, %v2413_v11 }
   0x7   :  { %v2542_v17 = vor.u32 %v3467_v15, %v2541_v14  ;;  %v2669_v18 = vld [vmem:[%s5411_s1 + $0x2c0] sm:$0xf]  ;;  %v3499_v19 = vld [vmem:[%s5411_s1 + $0x2cc] sm:$0xf0]  ;;  %1251 = vmatpush.bf16.msra.mxu3 %v2814_v12 }
   0x8   :  { %v2797_v20 = vld [vmem:[%s5411_s1 + $0x3c0] sm:$0xf]  ;;  %v2670_v21 = vor.u32 %v3499_v19, %v2669_v18  ;;  %v3531_v22 = vld [vmem:[%s5411_s1 + $0x3cc] sm:$0xf0]  ;;  %1213 = vmatpush.bf16.msra.mxu0 %v2414_v16 }
   0x9   :  { %v2397_v23 = vld [vmem:[%s5411_s1 + $0xa0] sm:$0xf]  ;;  %v3431_v24 = vld [vmem:[%s5411_s1 + $0xac] sm:$0xf0]  ;;  %v2798_v25 = vor.u32 %v3531_v22, %v2797_v20  ;;  %1226 = vmatpush.bf16.msra.mxu1 %v2542_v17 }
   0xa   :  { %v2525_v26 = vld [vmem:[%s5411_s1 + $0x1a0] sm:$0xf]  ;;  %v3463_v27 = vld [vmem:[%s5411_s1 + $0x1ac] sm:$0xf0]  ;;  %v2398_v29 = vor.u32 %v3431_v24, %v2397_v23  ;;  %1239 = vmatpush.bf16.msra.mxu2 %v2670_v21 }
   0xb   :  { %v2653_v28 = vld [vmem:[%s5411_s1 + $0x2a0] sm:$0xf]  ;;  %v3495_v30 = vld [vmem:[%s5411_s1 + $0x2ac] sm:$0xf0]  ;;  %v2526_v33 = vor.u32 %v3463_v27, %v2525_v26  ;;  %1252 = vmatpush.bf16.msra.mxu3 %v2798_v25 }
   0xc   :  { %v2781_v31 = vld [vmem:[%s5411_s1 + $0x3a0] sm:$0xf]  ;;  %v3527_v32 = vld [vmem:[%s5411_s1 + $0x3ac] sm:$0xf0]  ;;  %v2654_v34 = vor.u32 %v3495_v30, %v2653_v28  ;;  %1214 = vmatpush.bf16.msra.mxu0 %v2398_v29 }
   0xd   :  { %v2381_v35 = vld [vmem:[%s5411_s1 + $0x80] sm:$0xf]  ;;  %v3427_v36 = vld [vmem:[%s5411_s1 + $0x8c] sm:$0xf0]  ;;  %v2782_v38 = vor.u32 %v3527_v32, %v2781_v31  ;;  %1227 = vmatpush.bf16.msra.mxu1 %v2526_v33  ;;  %v3437_v33 = vld [vmem:[%s5411_s1 + $0xe4] sm:$0xf] }
   0xe   :  { %v2509_v37 = vld [vmem:[%s5411_s1 + $0x180] sm:$0xf]  ;;  %v3459_v39 = vld [vmem:[%s5411_s1 + $0x18c] sm:$0xf0]  ;;  %v2382_v44 = vor.u32 %v3427_v36, %v2381_v35  ;;  %1240 = vmatpush.bf16.msra.mxu2 %v2654_v34  ;;  %v2431_v34 = vld [vmem:[%s5411_s1 + $0xf0] sm:$0xf0] }
   0xf   :  { %v2637_v40 = vld [vmem:[%s5411_s1 + $0x280] sm:$0xf]  ;;  %v3491_v41 = vld [vmem:[%s5411_s1 + $0x28c] sm:$0xf0]  ;;  %v2510_v45 = vor.u32 %v3459_v39, %v2509_v37  ;;  %1253 = vmatpush.bf16.msra.mxu3 %v2782_v38  ;;  %v3469_v37 = vld [vmem:[%s5411_s1 + $0x1e4] sm:$0xf] }
  0x10   :  { %v2765_v42 = vld [vmem:[%s5411_s1 + $0x380] sm:$0xf]  ;;  %v3523_v43 = vld [vmem:[%s5411_s1 + $0x38c] sm:$0xf0]  ;;  %v2638_v46 = vor.u32 %v3491_v41, %v2637_v40  ;;  %1215 = vmatpush.bf16.msra.mxu0 %v2382_v44  ;;  %v2559_v38 = vld [vmem:[%s5411_s1 + $0x1f0] sm:$0xf0] }
  0x11   :  { %v2365_v47 = vld [vmem:[%s5411_s1 + $0x60] sm:$0xf]  ;;  %v3423_v48 = vld [vmem:[%s5411_s1 + $0x6c] sm:$0xf0]  ;;  %v2766_v50 = vor.u32 %v3523_v43, %v2765_v42  ;;  %1228 = vmatpush.bf16.msra.mxu1 %v2510_v45  ;;  %v2434_v42 = vor.u32 %v3437_v33, %v2431_v34  ;;  %v2495_v33 = vld [vmem:[%s5411_s1 + $0x170] sm:$0xf0] }
  0x12   :  { %v2493_v49 = vld [vmem:[%s5411_s1 + $0x160] sm:$0xf]  ;;  %v3455_v51 = vld [vmem:[%s5411_s1 + $0x16c] sm:$0xf0]  ;;  %v2366_v56 = vor.u32 %v3423_v48, %v2365_v47  ;;  %1241 = vmatpush.bf16.msra.mxu2 %v2638_v46  ;;  %v2562_v46 = vor.u32 %v3469_v37, %v2559_v38  ;;  %v3433_v48 = vld [vmem:[%s5411_s1 + $0xc4] sm:$0xf] }
  0x13   :  { %v2621_v52 = vld [vmem:[%s5411_s1 + $0x260] sm:$0xf]  ;;  %v3487_v53 = vld [vmem:[%s5411_s1 + $0x26c] sm:$0xf0]  ;;  %v2494_v57 = vor.u32 %v3455_v51, %v2493_v49  ;;  %1254 = vmatpush.bf16.msra.mxu3 %v2766_v50  ;;  %v2415_v49 = vld [vmem:[%s5411_s1 + $0xd0] sm:$0xf0] }
  0x14   :  { %v2749_v54 = vld [vmem:[%s5411_s1 + $0x360] sm:$0xf]  ;;  %v3519_v55 = vld [vmem:[%s5411_s1 + $0x36c] sm:$0xf0]  ;;  %v2622_v58 = vor.u32 %v3487_v53, %v2621_v52  ;;  %1216 = vmatpush.bf16.msra.mxu0 %v2366_v56  ;;  %v3465_v50 = vld [vmem:[%s5411_s1 + $0x1c4] sm:$0xf] }
  0x15   :  { %v2349_v59 = vld [vmem:[%s5411_s1 + $0x40] sm:$0xf]  ;;  %v3419_v60 = vld [vmem:[%s5411_s1 + $0x4c] sm:$0xf0]  ;;  %v2750_v62 = vor.u32 %v3519_v55, %v2749_v54  ;;  %1229 = vmatpush.bf16.msra.mxu1 %v2494_v57  ;;  %v2543_v51 = vld [vmem:[%s5411_s1 + $0x1d0] sm:$0xf0]  ;;  %v2418_v57 = vor.u32 %v3433_v48, %v2415_v49 }
  0x16   :  { %v2477_v61 = vld [vmem:[%s5411_s1 + $0x140] sm:$0xf]  ;;  %v3451_v63 = vld [vmem:[%s5411_s1 + $0x14c] sm:$0xf0]  ;;  %v2350_v4 = vor.u32 %v3419_v60, %v2349_v59  ;;  %1242 = vmatpush.bf16.msra.mxu2 %v2622_v58 }
  0x17   :  { %v2605_v0 = vld [vmem:[%s5411_s1 + $0x240] sm:$0xf]  ;;  %v3483_v1 = vld [vmem:[%s5411_s1 + $0x24c] sm:$0xf0]  ;;  %v2478_v5 = vor.u32 %v3451_v63, %v2477_v61  ;;  %1255 = vmatpush.bf16.msra.mxu3 %v2750_v62  ;;  %v2546_v61 = vor.u32 %v3465_v50, %v2543_v51  ;;  %v3429_v63 = vld [vmem:[%s5411_s1 + $0xa4] sm:$0xf] }
  0x18   :  { %v2733_v2 = vld [vmem:[%s5411_s1 + $0x340] sm:$0xf]  ;;  %v3515_v3 = vld [vmem:[%s5411_s1 + $0x34c] sm:$0xf0]  ;;  %v2606_v6 = vor.u32 %v3483_v1, %v2605_v0  ;;  %1217 = vmatpush.bf16.msra.mxu0 %v2350_v4  ;;  %v2399_v0 = vld [vmem:[%s5411_s1 + $0xb0] sm:$0xf0] }
  0x19   :  { %v2333_v7 = vld [vmem:[%s5411_s1 + $0x20] sm:$0xf]  ;;  %v3415_v8 = vld [vmem:[%s5411_s1 + $0x2c] sm:$0xf0]  ;;  %v2734_v10 = vor.u32 %v3515_v3, %v2733_v2  ;;  %1230 = vmatpush.bf16.msra.mxu1 %v2478_v5  ;;  %v3461_v3 = vld [vmem:[%s5411_s1 + $0x1a4] sm:$0xf] }
  0x1a   :  { %v2461_v9 = vld [vmem:[%s5411_s1 + $0x120] sm:$0xf]  ;;  %v3447_v11 = vld [vmem:[%s5411_s1 + $0x12c] sm:$0xf0]  ;;  %v2334_v16 = vor.u32 %v3415_v8, %v2333_v7  ;;  %1243 = vmatpush.bf16.msra.mxu2 %v2606_v6  ;;  %v2527_v4 = vld [vmem:[%s5411_s1 + $0x1b0] sm:$0xf0]  ;;  %v2402_v8 = vor.u32 %v3429_v63, %v2399_v0 }
  0x1b   :  { %v2589_v12 = vld [vmem:[%s5411_s1 + $0x220] sm:$0xf]  ;;  %v3479_v13 = vld [vmem:[%s5411_s1 + $0x22c] sm:$0xf0]  ;;  %v2462_v19 = vor.u32 %v3447_v11, %v2461_v9  ;;  %1256 = vmatpush.bf16.msra.mxu3 %v2734_v10  ;;  %v27_v6 = vld [vmem:[%s5412_s0 + $0x8] sm:$0xff] }
  0x1c   :  { %v2717_v14 = vld [vmem:[%s5411_s1 + $0x320] sm:$0xf]  ;;  %v3511_v15 = vld [vmem:[%s5411_s1 + $0x32c] sm:$0xf0]  ;;  %v2590_v20 = vor.u32 %v3479_v13, %v2589_v12  ;;  %1218 = vmatpush.bf16.msra.mxu0 %v2334_v16  ;;  %v236_v12 = vunpack.c.l.b16 %v27_v6  ;;  %v237_v13 = vunpack.c.h.b16 %v27_v6  ;;  %v3425_v16 = vld [vmem:[%s5411_s1 + $0x84] sm:$0xf] }
  0x1d   :  { %v2317_v17 = vld [vmem:[%s5411_s1] sm:$0xf]  ;;  %v3411_v18 = vld [vmem:[%s5411_s1 + $0xc] sm:$0xf0]  ;;  %v2718_v24 = vor.u32 %v3511_v15, %v2717_v14  ;;  %1231 = vmatpush.bf16.msra.mxu1 %v2462_v19  ;;  %v2530_v14 = vor.u32 %v3461_v3, %v2527_v4  ;;  %v2511_v19 = vld [vmem:[%s5411_s1 + $0x190] sm:$0xf0] }
  0x1e   :  { %v2445_v21 = vld [vmem:[%s5411_s1 + $0x100] sm:$0xf]  ;;  %v3443_v22 = vld [vmem:[%s5411_s1 + $0x10c] sm:$0xf0]  ;;  %v2318_v31 = vor.u32 %v3411_v18, %v2317_v17  ;;  %1244 = vmatpush.bf16.msra.mxu2 %v2590_v20  ;;  %v2383_v17 = vld [vmem:[%s5411_s1 + $0x90] sm:$0xf0]  ;;  %v4050_v20 = vpack.c.b16 %v236_v12, %v236_v12 }
  0x1f   :  { %v2573_v23 = vld [vmem:[%s5411_s1 + $0x200] sm:$0xf]  ;;  %v3475_v25 = vld [vmem:[%s5411_s1 + $0x20c] sm:$0xf0]  ;;  %v2446_v35 = vor.u32 %v3443_v22, %v2445_v21  ;;  %1257 = vmatpush.bf16.msra.mxu3 %v2718_v24  ;;  %v3457_v18 = vld [vmem:[%s5411_s1 + $0x184] sm:$0xf]  ;;  %v4052_v21 = vpack.c.b16 %v237_v13, %v237_v13  ;;  %v2386_v24 = vor.u32 %v3425_v16, %v2383_v17 }
  0x20   :  { %v2701_v26 = vld [vmem:[%s5411_s1 + $0x300] sm:$0xf]  ;;  %v3507_v27 = vld [vmem:[%s5411_s1 + $0x30c] sm:$0xf0]  ;;  %v2574_v36 = vor.u32 %v3475_v25, %v2573_v23  ;;  %1219 = vmatpush.bf16.msra.mxu0 %v2318_v31  ;;  %v2367_v31 = vld [vmem:[%s5411_s1 + $0x70] sm:$0xf0] }
  0x21   :  { %v2941_v28 = vld [vmem:[%s5411_s1 + $0x4e0] sm:$0xf]  ;;  %v3567_v29 = vld [vmem:[%s5411_s1 + $0x4ec] sm:$0xf0]  ;;  %v2702_v39 = vor.u32 %v3507_v27, %v2701_v26  ;;  %1232 = vmatpush.bf16.msra.mxu1 %v2446_v35  ;;  %v3409_v3 = vld [vmem:[%s5411_s1 + $0x4] sm:$0xf] }
  0x22   :  { %v3069_v30 = vld [vmem:[%s5411_s1 + $0x5e0] sm:$0xf]  ;;  %v3599_v32 = vld [vmem:[%s5411_s1 + $0x5ec] sm:$0xf0]  ;;  %v2942_v40 = vor.u32 %v3567_v29, %v2941_v28  ;;  %1245 = vmatpush.bf16.msra.mxu2 %v2574_v36  ;;  %v2514_v28 = vor.u32 %v3457_v18, %v2511_v19  ;;  %v2319_v6 = vld [vmem:[%s5411_s1 + $0x10] sm:$0xf0] }
  0x23   :  { %v3070_v41 = vor.u32 %v3599_v32, %v3069_v30  ;;  %v2925_v43 = vld [vmem:[%s5411_s1 + $0x4c0] sm:$0xf]  ;;  %v3563_v44 = vld [vmem:[%s5411_s1 + $0x4cc] sm:$0xf0]  ;;  %1258 = vmatpush.bf16.msra.mxu3 %v2702_v39  ;;  %v3421_v30 = vld [vmem:[%s5411_s1 + $0x64] sm:$0xf]  ;;  %v2322_v18 = vor.u32 %v3409_v3, %v2319_v6 }
  0x24   :  { %v3053_v45 = vld [vmem:[%s5411_s1 + $0x5c0] sm:$0xf]  ;;  %v3595_v47 = vld [vmem:[%s5411_s1 + $0x5cc] sm:$0xf0]  ;;  %1264 = vmatpush.bf16.msrb.mxu0 %v2942_v40  ;;  %v2926_v53 = vor.u32 %v3563_v44, %v2925_v43  ;;  %v3453_v32 = vld [vmem:[%s5411_s1 + $0x164] sm:$0xf]  ;;  %v2370_v36 = vor.u32 %v3421_v30, %v2367_v31 }
  0x25   :  { %v26_v52 = vld [vmem:[%s5412_s0] sm:$0xff]  ;;  %1277 = vmatpush.bf16.msrb.mxu1 %v3070_v41  ;;  %v3054_v56 = vor.u32 %v3595_v47, %v3053_v45  ;;  %v3559_v59 = vld [vmem:[%s5411_s1 + $0x4ac] sm:$0xf0]  ;;  %1246 = vmatmul.bf16.vlgmr.msra.gmra.mxu2 %v4050_v20  ;;  %v2498_v40 = vor.u32 %v3453_v32, %v2495_v33  ;;  %v2351_v43 = vld [vmem:[%s5411_s1 + $0x50] sm:$0xf0] }
  0x26   :  { %v234_v54 = vunpack.c.l.b16 %v26_v52  ;;  %v235_v55 = vunpack.c.h.b16 %v26_v52  ;;  %1290 = vmatpush.bf16.msrb.mxu2 %v2434_v42  ;;  %v2909_v58 = vld [vmem:[%s5411_s1 + $0x4a0] sm:$0xf]  ;;  %v3591_v62 = vld [vmem:[%s5411_s1 + $0x5ac] sm:$0xf0]  ;;  %1259 = vmatmul.bf16.vlgmr.msra.gmra.mxu3 %v4052_v21  ;;  %v3417_v42 = vld [vmem:[%s5411_s1 + $0x44] sm:$0xf] }
  0x27   :  { %v3037_v60 = vld [vmem:[%s5411_s1 + $0x5a0] sm:$0xf]  ;;  %1303 = vmatpush.bf16.msrb.mxu3 %v2562_v46  ;;  %v2910_v5 = vor.u32 %v3559_v59, %v2909_v58  ;;  %v3555_v10 = vld [vmem:[%s5411_s1 + $0x48c] sm:$0xf0]  ;;  %v3449_v44 = vld [vmem:[%s5411_s1 + $0x144] sm:$0xf]  ;;  %v2354_v48 = vor.u32 %v3417_v42, %v2351_v43 }
  0x28   :  { %v4011_v1 = vpack.c.b16 %v234_v54, %v234_v54  ;;  %v4013_v2 = vpack.c.b16 %v235_v55, %v235_v55  ;;  %1265 = vmatpush.bf16.msrb.mxu0 %v2926_v53  ;;  %v3038_v7 = vor.u32 %v3591_v62, %v3037_v60  ;;  %v2893_v9 = vld [vmem:[%s5411_s1 + $0x480] sm:$0xf]  ;;  %v3587_v15 = vld [vmem:[%s5411_s1 + $0x58c] sm:$0xf0]  ;;  %v2479_v45 = vld [vmem:[%s5411_s1 + $0x150] sm:$0xf0] }
  0x29   :  { %1278 = vmatpush.bf16.msrb.mxu1 %v3054_v56  ;;  %v3021_v11 = vld [vmem:[%s5411_s1 + $0x580] sm:$0xf]  ;;  %v2894_v22 = vor.u32 %v3555_v10, %v2893_v9  ;;  %v3551_v26 = vld [vmem:[%s5411_s1 + $0x46c] sm:$0xf0]  ;;  %v2482_v52 = vor.u32 %v3449_v44, %v2479_v45  ;;  %v3413_v54 = vld [vmem:[%s5411_s1 + $0x24] sm:$0xf] }
  0x2a   :  { %1233 = vmatmul.bf16.vlgmr.msra.gmra.mxu1 %v4013_v2  ;;  %1291 = vmatpush.bf16.msrb.mxu2 %v2418_v57  ;;  %v3022_v23 = vor.u32 %v3587_v15, %v3021_v11  ;;  %v2877_v25 = vld [vmem:[%s5411_s1 + $0x460] sm:$0xf]  ;;  %v3583_v29 = vld [vmem:[%s5411_s1 + $0x56c] sm:$0xf0]  ;;  %v2335_v55 = vld [vmem:[%s5411_s1 + $0x30] sm:$0xf0] }
  0x2b   :  { %1304 = vmatpush.bf16.msrb.mxu3 %v2546_v61  ;;  %1220 = vmatmul.bf16.vlgmr.msra.gmra.mxu0 %v4011_v1  ;;  %v3005_v27 = vld [vmem:[%s5411_s1 + $0x560] sm:$0xf]  ;;  %v2878_v34 = vor.u32 %v3551_v26, %v2877_v25  ;;  %v3547_v38 = vld [vmem:[%s5411_s1 + $0x44c] sm:$0xf0]  ;;  %v3445_v56 = vld [vmem:[%s5411_s1 + $0x124] sm:$0xf]  ;;  %v2338_v63 = vor.u32 %v3413_v54, %v2335_v55 }
  0x2c   :  { %1266 = vmatpush.bf16.msrb.mxu0 %v2910_v5  ;;  %v3006_v35 = vor.u32 %v3583_v29, %v3005_v27  ;;  %v2861_v37 = vld [vmem:[%s5411_s1 + $0x440] sm:$0xf]  ;;  %v3579_v41 = vld [vmem:[%s5411_s1 + $0x54c] sm:$0xf0]  ;;  %v2463_v57 = vld [vmem:[%s5411_s1 + $0x130] sm:$0xf0] }
  0x2d   :  { %1279 = vmatpush.bf16.msrb.mxu1 %v3038_v7  ;;  %v2989_v39 = vld [vmem:[%s5411_s1 + $0x540] sm:$0xf]  ;;  %v2862_v46 = vor.u32 %v3547_v38, %v2861_v37  ;;  %v3543_v50 = vld [vmem:[%s5411_s1 + $0x42c] sm:$0xf0]  ;;  %v2466_v5 = vor.u32 %v3445_v56, %v2463_v57  ;;  %v3441_v7 = vld [vmem:[%s5411_s1 + $0x104] sm:$0xf] }
  0x2e   :  { %1292 = vmatpush.bf16.msrb.mxu2 %v2402_v8  ;;  %v2990_v47 = vor.u32 %v3579_v41, %v2989_v39  ;;  %v2845_v49 = vld [vmem:[%s5411_s1 + $0x420] sm:$0xf]  ;;  %v3575_v53 = vld [vmem:[%s5411_s1 + $0x52c] sm:$0xf0]  ;;  %v2447_v8 = vld [vmem:[%s5411_s1 + $0x110] sm:$0xf0] }
  0x2f   :  { %1305 = vmatpush.bf16.msrb.mxu3 %v2530_v14  ;;  %v2973_v51 = vld [vmem:[%s5411_s1 + $0x520] sm:$0xf]  ;;  %v2846_v58 = vor.u32 %v3543_v50, %v2845_v49  ;;  %v3539_v60 = vld [vmem:[%s5411_s1 + $0x40c] sm:$0xf0]  ;;  %v3501_v9 = vld [vmem:[%s5411_s1 + $0x2e4] sm:$0xf] }
  0x30   :  { %1267 = vmatpush.bf16.msrb.mxu0 %v2894_v22  ;;  %v2829_v59 = vld [vmem:[%s5411_s1 + $0x400] sm:$0xf]  ;;  %v2974_v62 = vor.u32 %v3575_v53, %v2973_v51  ;;  %v3571_v0 = vld [vmem:[%s5411_s1 + $0x50c] sm:$0xf0]  ;;  %v2687_v10 = vld [vmem:[%s5411_s1 + $0x2f0] sm:$0xf0] }
  0x31   :  { %1280 = vmatpush.bf16.msrb.mxu1 %v3022_v23  ;;  %v2957_v61 = vld [vmem:[%s5411_s1 + $0x500] sm:$0xf]  ;;  %v28_v4 = vld [vmem:[%s5412_s0 + $0x10] sm:$0xff]  ;;  %v3533_v11 = vld [vmem:[%s5411_s1 + $0x3e4] sm:$0xf]  ;;  %v2830_v12 = vor.u32 %v3539_v60, %v2829_v59  ;;  %v2690_v25 = vor.u32 %v3501_v9, %v2687_v10 }
  0x32   :  { %1293 = vmatpush.bf16.msrb.mxu2 %v2386_v24  ;;  %v2815_v13 = vld [vmem:[%s5411_s1 + $0x3f0] sm:$0xf0]  ;;  %v3565_v14 = vld [vmem:[%s5411_s1 + $0x4e4] sm:$0xf]  ;;  %v238_v16 = vunpack.c.l.b16 %v28_v4  ;;  %v2958_v17 = vor.u32 %v3571_v0, %v2957_v61  ;;  %v239_v23 = vunpack.c.h.b16 %v28_v4  ;;  %v2450_v24 = vor.u32 %v3441_v7, %v2447_v8 }
  0x33   :  { %1306 = vmatpush.bf16.msrb.mxu3 %v2514_v28  ;;  %v2943_v15 = vld [vmem:[%s5411_s1 + $0x4f0] sm:$0xf0]  ;;  %v3597_v19 = vld [vmem:[%s5411_s1 + $0x5e4] sm:$0xf]  ;;  %v2818_v26 = vor.u32 %v3533_v11, %v2815_v13 }
  0x34   :  { %1268 = vmatpush.bf16.msrb.mxu0 %v2878_v34  ;;  %v3071_v22 = vld [vmem:[%s5411_s1 + $0x5f0] sm:$0xf0]  ;;  %v2946_v27 = vor.u32 %v3565_v14, %v2943_v15  ;;  %v3497_v28 = vld [vmem:[%s5411_s1 + $0x2c4] sm:$0xf]  ;;  %v4188_v32 = vpack.c.b16 %v238_v16, %v238_v16 }
  0x35   :  { %1281 = vmatpush.bf16.msrb.mxu1 %v3006_v35  ;;  %v2671_v29 = vld [vmem:[%s5411_s1 + $0x2d0] sm:$0xf0]  ;;  %v3529_v30 = vld [vmem:[%s5411_s1 + $0x3c4] sm:$0xf]  ;;  %v3074_v31 = vor.u32 %v3597_v19, %v3071_v22 }
  0x36   :  { %1294 = vmatpush.bf16.msrb.mxu2 %v2370_v36  ;;  %v2799_v33 = vld [vmem:[%s5411_s1 + $0x3d0] sm:$0xf0]  ;;  %v3561_v34 = vld [vmem:[%s5411_s1 + $0x4c4] sm:$0xf]  ;;  %v4199_v36 = vpack.c.b16 %v239_v23, %v239_v23  ;;  %v2674_v39 = vor.u32 %v3497_v28, %v2671_v29 }
  0x37   :  { %1307 = vmatpush.bf16.msrb.mxu3 %v2498_v40  ;;  %v2927_v35 = vld [vmem:[%s5411_s1 + $0x4d0] sm:$0xf0]  ;;  %v3593_v37 = vld [vmem:[%s5411_s1 + $0x5c4] sm:$0xf]  ;;  %v2802_v40 = vor.u32 %v3529_v30, %v2799_v33 }
  0x38   :  { %1269 = vmatpush.bf16.msrb.mxu0 %v2862_v46  ;;  %v3055_v38 = vld [vmem:[%s5411_s1 + $0x5d0] sm:$0xf0]  ;;  %v2930_v41 = vor.u32 %v3561_v34, %v2927_v35  ;;  %v3493_v42 = vld [vmem:[%s5411_s1 + $0x2a4] sm:$0xf] }
  0x39   :  { %1282 = vmatpush.bf16.msrb.mxu1 %v2990_v47  ;;  %v2655_v43 = vld [vmem:[%s5411_s1 + $0x2b0] sm:$0xf0]  ;;  %v3525_v44 = vld [vmem:[%s5411_s1 + $0x3a4] sm:$0xf]  ;;  %v3058_v45 = vor.u32 %v3593_v37, %v3055_v38 }
  0x3a   :  { %1295 = vmatpush.bf16.msrb.mxu2 %v2354_v48  ;;  %v2783_v46 = vld [vmem:[%s5411_s1 + $0x3b0] sm:$0xf0]  ;;  %v3557_v47 = vld [vmem:[%s5411_s1 + $0x4a4] sm:$0xf]  ;;  %v2658_v51 = vor.u32 %v3493_v42, %v2655_v43 }
  0x3b   :  { %1308 = vmatpush.bf16.msrb.mxu3 %v2482_v52  ;;  %v2911_v48 = vld [vmem:[%s5411_s1 + $0x4b0] sm:$0xf0]  ;;  %v3589_v49 = vld [vmem:[%s5411_s1 + $0x5a4] sm:$0xf]  ;;  %v2786_v52 = vor.u32 %v3525_v44, %v2783_v46 }
  0x3c   :  { %1270 = vmatpush.bf16.msrb.mxu0 %v2846_v58  ;;  %v3039_v50 = vld [vmem:[%s5411_s1 + $0x5b0] sm:$0xf0]  ;;  %v2914_v53 = vor.u32 %v3557_v47, %v2911_v48  ;;  %v3489_v54 = vld [vmem:[%s5411_s1 + $0x284] sm:$0xf] }
  0x3d   :  { %1283 = vmatpush.bf16.msrb.mxu1 %v2974_v62  ;;  %v2639_v55 = vld [vmem:[%s5411_s1 + $0x290] sm:$0xf0]  ;;  %v3521_v56 = vld [vmem:[%s5411_s1 + $0x384] sm:$0xf]  ;;  %v3042_v57 = vor.u32 %v3589_v49, %v3039_v50 }
  0x3e   :  { %1296 = vmatpush.bf16.msrb.mxu2 %v2338_v63  ;;  %v2767_v58 = vld [vmem:[%s5411_s1 + $0x390] sm:$0xf0]  ;;  %v3553_v59 = vld [vmem:[%s5411_s1 + $0x484] sm:$0xf]  ;;  %v2642_v63 = vor.u32 %v3489_v54, %v2639_v55  ;;  %v3440_v54 = vld [vmem:[%s5411_s1 + $0xf4] sm:$0xf0] }
  0x3f   :  { %1309 = vmatpush.bf16.msrb.mxu3 %v2466_v5  ;;  %v2895_v60 = vld [vmem:[%s5411_s1 + $0x490] sm:$0xf0]  ;;  %v3585_v61 = vld [vmem:[%s5411_s1 + $0x584] sm:$0xf]  ;;  %v2770_v0 = vor.u32 %v3521_v56, %v2767_v58  ;;  %v2565_v55 = vld [vmem:[%s5411_s1 + $0x1e8] sm:$0xf] }
  0x40   :  { %1271 = vmatpush.bf16.msrb.mxu0 %v2830_v12  ;;  %v3023_v62 = vld [vmem:[%s5411_s1 + $0x590] sm:$0xf0]  ;;  %v2898_v3 = vor.u32 %v3553_v59, %v2895_v60  ;;  %v3485_v4 = vld [vmem:[%s5411_s1 + $0x264] sm:$0xf]  ;;  %v2693_v58 = vld [vmem:[%s5411_s1 + $0x2e8] sm:$0xf] }
  0x41   :  { %1284 = vmatpush.bf16.msrb.mxu1 %v2958_v17  ;;  %v2623_v5 = vld [vmem:[%s5411_s1 + $0x270] sm:$0xf0]  ;;  %v3517_v6 = vld [vmem:[%s5411_s1 + $0x364] sm:$0xf]  ;;  %v3026_v7 = vor.u32 %v3585_v61, %v3023_v62  ;;  %v3504_v59 = vld [vmem:[%s5411_s1 + $0x2f4] sm:$0xf0] }
  0x42   :  { %1297 = vmatpush.bf16.msrb.mxu2 %v2322_v18  ;;  %v2751_v8 = vld [vmem:[%s5411_s1 + $0x370] sm:$0xf0]  ;;  %v3549_v9 = vld [vmem:[%s5411_s1 + $0x464] sm:$0xf]  ;;  %v2626_v13 = vor.u32 %v3485_v4, %v2623_v5  ;;  %v2821_v62 = vld [vmem:[%s5411_s1 + $0x3e8] sm:$0xf]  ;;  %v2694_v5 = vor.u32 %v3504_v59, %v2693_v58 }
  0x43   :  { %1310 = vmatpush.bf16.msrb.mxu3 %v2450_v24  ;;  %1272 = vmatmul.bf16.vlgmr.msrb.gmra.mxu0 %v4188_v32  ;;  %v2879_v10 = vld [vmem:[%s5411_s1 + $0x470] sm:$0xf0]  ;;  %v3581_v11 = vld [vmem:[%s5411_s1 + $0x564] sm:$0xf]  ;;  %v2754_v14 = vor.u32 %v3517_v6, %v2751_v8  ;;  %v2421_v6 = vld [vmem:[%s5411_s1 + $0xc8] sm:$0xf] }
  0x44   :  { %1316 = vmatpush.bf16.msra.mxu0 %v2690_v25  ;;  %1285 = vmatmul.bf16.vlgmr.msrb.gmra.mxu1 %v4199_v36  ;;  %v3007_v12 = vld [vmem:[%s5411_s1 + $0x570] sm:$0xf0]  ;;  %v2882_v15 = vor.u32 %v3549_v9, %v2879_v10  ;;  %v3481_v16 = vld [vmem:[%s5411_s1 + $0x244] sm:$0xf]  ;;  %v2549_v8 = vld [vmem:[%s5411_s1 + $0x1c8] sm:$0xf] }
  0x45   :  { %1329 = vmatpush.bf16.msra.mxu1 %v2818_v26  ;;  %1298 = vmatmul.bf16.vlgmr.msrb.gmra.mxu2 %v4011_v1  ;;  %v2607_v17 = vld [vmem:[%s5411_s1 + $0x250] sm:$0xf0]  ;;  %v3513_v18 = vld [vmem:[%s5411_s1 + $0x344] sm:$0xf]  ;;  %v3010_v19 = vor.u32 %v3581_v11, %v3007_v12  ;;  %v3468_v10 = vld [vmem:[%s5411_s1 + $0x1d4] sm:$0xf0] }
  0x46   :  { %1342 = vmatpush.bf16.msra.mxu2 %v2946_v27  ;;  %1311 = vmatmul.bf16.vlgmr.msrb.gmra.mxu3 %v4013_v2  ;;  %v2735_v22 = vld [vmem:[%s5411_s1 + $0x350] sm:$0xf0]  ;;  %v3545_v23 = vld [vmem:[%s5411_s1 + $0x444] sm:$0xf]  ;;  %v2610_v27 = vor.u32 %v3481_v16, %v2607_v17  ;;  %v2677_v11 = vld [vmem:[%s5411_s1 + $0x2c8] sm:$0xf]  ;;  %v2550_v16 = vor.u32 %v3468_v10, %v2549_v8 }
  0x47   :  { %1355 = vmatpush.bf16.msra.mxu3 %v3074_v31  ;;  %v2863_v24 = vld [vmem:[%s5411_s1 + $0x450] sm:$0xf0]  ;;  %v3577_v25 = vld [vmem:[%s5411_s1 + $0x544] sm:$0xf]  ;;  %v2738_v28 = vor.u32 %v3513_v18, %v2735_v22  ;;  %v3500_v12 = vld [vmem:[%s5411_s1 + $0x2d4] sm:$0xf0] }
  0x48   :  { %1317 = vmatpush.bf16.msra.mxu0 %v2674_v39  ;;  %v2991_v26 = vld [vmem:[%s5411_s1 + $0x550] sm:$0xf0]  ;;  %v2866_v29 = vor.u32 %v3545_v23, %v2863_v24  ;;  %v3477_v30 = vld [vmem:[%s5411_s1 + $0x224] sm:$0xf]  ;;  %v2678_v17 = vor.u32 %v3500_v12, %v2677_v11  ;;  %v2405_v18 = vld [vmem:[%s5411_s1 + $0xa8] sm:$0xf] }
  0x49   :  { %1330 = vmatpush.bf16.msra.mxu1 %v2802_v40  ;;  %v2591_v31 = vld [vmem:[%s5411_s1 + $0x230] sm:$0xf0]  ;;  %v3509_v33 = vld [vmem:[%s5411_s1 + $0x324] sm:$0xf]  ;;  %v2994_v34 = vor.u32 %v3577_v25, %v2991_v26  ;;  %v2533_v22 = vld [vmem:[%s5411_s1 + $0x1a8] sm:$0xf] }
  0x4a   :  { %1343 = vmatpush.bf16.msra.mxu2 %v2930_v41  ;;  %v2719_v35 = vld [vmem:[%s5411_s1 + $0x330] sm:$0xf0]  ;;  %v3541_v37 = vld [vmem:[%s5411_s1 + $0x424] sm:$0xf]  ;;  %v2594_v41 = vor.u32 %v3477_v30, %v2591_v31  ;;  %v3464_v24 = vld [vmem:[%s5411_s1 + $0x1b4] sm:$0xf0] }
  0x4b   :  { %1356 = vmatpush.bf16.msra.mxu3 %v3058_v45  ;;  %v2847_v38 = vld [vmem:[%s5411_s1 + $0x430] sm:$0xf0]  ;;  %v3573_v39 = vld [vmem:[%s5411_s1 + $0x524] sm:$0xf]  ;;  %v2722_v44 = vor.u32 %v3509_v33, %v2719_v35  ;;  %v2661_v25 = vld [vmem:[%s5411_s1 + $0x2a8] sm:$0xf]  ;;  %v2534_v30 = vor.u32 %v3464_v24, %v2533_v22 }
  0x4c   :  { %1318 = vmatpush.bf16.msra.mxu0 %v2658_v51  ;;  %v2975_v40 = vld [vmem:[%s5411_s1 + $0x530] sm:$0xf0]  ;;  %v3473_v42 = vld [vmem:[%s5411_s1 + $0x204] sm:$0xf]  ;;  %v2850_v45 = vor.u32 %v3541_v37, %v2847_v38  ;;  %v3496_v26 = vld [vmem:[%s5411_s1 + $0x2b4] sm:$0xf0] }
  0x4d   :  { %1331 = vmatpush.bf16.msra.mxu1 %v2786_v52  ;;  %v2575_v43 = vld [vmem:[%s5411_s1 + $0x210] sm:$0xf0]  ;;  %v3505_v46 = vld [vmem:[%s5411_s1 + $0x304] sm:$0xf]  ;;  %v2978_v49 = vor.u32 %v3573_v39, %v2975_v40  ;;  %v2662_v31 = vor.u32 %v3496_v26, %v2661_v25  ;;  %v2389_v33 = vld [vmem:[%s5411_s1 + $0x88] sm:$0xf] }
  0x4e   :  { %1344 = vmatpush.bf16.msra.mxu2 %v2914_v53  ;;  %v2703_v47 = vld [vmem:[%s5411_s1 + $0x310] sm:$0xf0]  ;;  %v3537_v48 = vld [vmem:[%s5411_s1 + $0x404] sm:$0xf]  ;;  %v2437_v53 = vld [vmem:[%s5411_s1 + $0xe8] sm:$0xf]  ;;  %v2578_v56 = vor.u32 %v3473_v42, %v2575_v43 }
  0x4f   :  { %1357 = vmatpush.bf16.msra.mxu3 %v3042_v57  ;;  %v2831_v50 = vld [vmem:[%s5411_s1 + $0x410] sm:$0xf0]  ;;  %v3569_v51 = vld [vmem:[%s5411_s1 + $0x504] sm:$0xf]  ;;  %v3472_v57 = vld [vmem:[%s5411_s1 + $0x1f4] sm:$0xf0]  ;;  %v2706_v60 = vor.u32 %v3505_v46, %v2703_v47 }
  0x50   :  { %1319 = vmatpush.bf16.msra.mxu0 %v2642_v63  ;;  %v2959_v52 = vld [vmem:[%s5411_s1 + $0x510] sm:$0xf0]  ;;  %v2834_v61 = vor.u32 %v3537_v48, %v2831_v50  ;;  %v3536_v63 = vld [vmem:[%s5411_s1 + $0x3f4] sm:$0xf0]  ;;  %v2566_v4 = vor.u32 %v3472_v57, %v2565_v55  ;;  %v2517_v35 = vld [vmem:[%s5411_s1 + $0x188] sm:$0xf] }
  0x51   :  { %1332 = vmatpush.bf16.msra.mxu1 %v2770_v0  ;;  %v2962_v0 = vor.u32 %v3569_v51, %v2959_v52  ;;  %v2822_v9 = vor.u32 %v3536_v63, %v2821_v62  ;;  %v3460_v38 = vld [vmem:[%s5411_s1 + $0x194] sm:$0xf0]  ;;  %v2645_v39 = vld [vmem:[%s5411_s1 + $0x288] sm:$0xf] }
  0x52   :  { %1345 = vmatpush.bf16.msra.mxu2 %v2898_v3  ;;  %v2438_v3 = vor.u32 %v3440_v54, %v2437_v53  ;;  %v3492_v40 = vld [vmem:[%s5411_s1 + $0x294] sm:$0xf0]  ;;  %v2373_v46 = vld [vmem:[%s5411_s1 + $0x68] sm:$0xf] }
  0x53   :  { %1358 = vmatpush.bf16.msra.mxu3 %v3026_v7  ;;  %v3436_v7 = vld [vmem:[%s5411_s1 + $0xd4] sm:$0xf0]  ;;  %v2501_v48 = vld [vmem:[%s5411_s1 + $0x168] sm:$0xf] }
  0x54   :  { %1320 = vmatpush.bf16.msra.mxu0 %v2626_v13  ;;  %v2805_v13 = vld [vmem:[%s5411_s1 + $0x3c8] sm:$0xf]  ;;  %v3524_v42 = vld [vmem:[%s5411_s1 + $0x394] sm:$0xf0] }
  0x55   :  { %1333 = vmatpush.bf16.msra.mxu1 %v2754_v14  ;;  %v3532_v14 = vld [vmem:[%s5411_s1 + $0x3d4] sm:$0xf0]  ;;  %v2629_v51 = vld [vmem:[%s5411_s1 + $0x268] sm:$0xf] }
  0x56   :  { %1346 = vmatpush.bf16.msra.mxu2 %v2882_v15  ;;  %v2422_v15 = vor.u32 %v3436_v7, %v2421_v6  ;;  %v2806_v23 = vor.u32 %v3532_v14, %v2805_v13  ;;  %v3424_v47 = vld [vmem:[%s5411_s1 + $0x74] sm:$0xf0]  ;;  %v2757_v53 = vld [vmem:[%s5411_s1 + $0x368] sm:$0xf] }
  0x57   :  { %1359 = vmatpush.bf16.msra.mxu3 %v3010_v19  ;;  %v3432_v19 = vld [vmem:[%s5411_s1 + $0xb4] sm:$0xf0]  ;;  %v2374_v55 = vor.u32 %v3424_v47, %v2373_v46  ;;  %v2357_v58 = vld [vmem:[%s5411_s1 + $0x48] sm:$0xf] }
  0x58   :  { %1321 = vmatpush.bf16.msra.mxu0 %v2610_v27  ;;  %v2789_v27 = vld [vmem:[%s5411_s1 + $0x3a8] sm:$0xf]  ;;  %v3456_v50 = vld [vmem:[%s5411_s1 + $0x174] sm:$0xf0] }
  0x59   :  { %1334 = vmatpush.bf16.msra.mxu1 %v2738_v28  ;;  %v3528_v28 = vld [vmem:[%s5411_s1 + $0x3b4] sm:$0xf0]  ;;  %v2613_v63 = vld [vmem:[%s5411_s1 + $0x248] sm:$0xf] }
  0x5a   :  { %1347 = vmatpush.bf16.msra.mxu2 %v2866_v29  ;;  %v2406_v29 = vor.u32 %v3432_v19, %v2405_v18  ;;  %v2790_v37 = vor.u32 %v3528_v28, %v2789_v27  ;;  %v3488_v52 = vld [vmem:[%s5411_s1 + $0x274] sm:$0xf0]  ;;  %v2341_v8 = vld [vmem:[%s5411_s1 + $0x28] sm:$0xf] }
  0x5b   :  { %1360 = vmatpush.bf16.msra.mxu3 %v2994_v34  ;;  %v3428_v34 = vld [vmem:[%s5411_s1 + $0x94] sm:$0xf0]  ;;  %v2630_v57 = vor.u32 %v3488_v52, %v2629_v51  ;;  %v2469_v10 = vld [vmem:[%s5411_s1 + $0x128] sm:$0xf] }
  0x5c   :  { %1322 = vmatpush.bf16.msra.mxu0 %v2594_v41  ;;  %v2773_v41 = vld [vmem:[%s5411_s1 + $0x388] sm:$0xf]  ;;  %v2390_v43 = vor.u32 %v3428_v34, %v2389_v33  ;;  %v3520_v54 = vld [vmem:[%s5411_s1 + $0x374] sm:$0xf0] }
  0x5d   :  { %1335 = vmatpush.bf16.msra.mxu1 %v2722_v44  ;;  %v2518_v44 = vor.u32 %v3460_v38, %v2517_v35  ;;  %v3420_v59 = vld [vmem:[%s5411_s1 + $0x54] sm:$0xf0]  ;;  %v2597_v13 = vld [vmem:[%s5411_s1 + $0x228] sm:$0xf]  ;;  %v3438_v38 = vld [vmem:[%s5411_s1 + $0xec] sm:$0xf] }
  0x5e   :  { %1348 = vmatpush.bf16.msra.mxu2 %v2850_v45  ;;  %v2646_v45 = vor.u32 %v3492_v40, %v2645_v39  ;;  %v3452_v62 = vld [vmem:[%s5411_s1 + $0x154] sm:$0xf0]  ;;  %v2325_v18 = vld [vmem:[%s5411_s1 + $0x8] sm:$0xf]  ;;  %v2439_v39 = vld [vmem:[%s5411_s1 + $0xf8] sm:$0xf0] }
  0x5f   :  { %1361 = vmatpush.bf16.msra.mxu3 %v2978_v49  ;;  %v2774_v49 = vor.u32 %v3524_v42, %v2773_v41  ;;  %v3448_v12 = vld [vmem:[%s5411_s1 + $0x134] sm:$0xf0]  ;;  %v2453_v24 = vld [vmem:[%s5411_s1 + $0x108] sm:$0xf]  ;;  %v3470_v42 = vld [vmem:[%s5411_s1 + $0x1ec] sm:$0xf]  ;;  %v2442_v47 = vor.u32 %v3438_v38, %v2439_v39 }
  0x60   :  { %1323 = vmatpush.bf16.msra.mxu0 %v2578_v56  ;;  %v2502_v56 = vor.u32 %v3456_v50, %v2501_v48  ;;  %v3480_v14 = vld [vmem:[%s5411_s1 + $0x234] sm:$0xf0]  ;;  %v2470_v22 = vor.u32 %v3448_v12, %v2469_v10  ;;  %v2581_v26 = vld [vmem:[%s5411_s1 + $0x208] sm:$0xf] }
  0x61   :  { %1336 = vmatpush.bf16.msra.mxu1 %v2706_v60  ;;  %v2485_v60 = vld [vmem:[%s5411_s1 + $0x148] sm:$0xf]  ;;  %v3412_v19 = vld [vmem:[%s5411_s1 + $0x14] sm:$0xf0] }
  0x62   :  { %1349 = vmatpush.bf16.msra.mxu2 %v2834_v61  ;;  %v2758_v61 = vor.u32 %v3520_v54, %v2757_v53  ;;  %v2486_v6 = vor.u32 %v3452_v62, %v2485_v60  ;;  %v3444_v25 = vld [vmem:[%s5411_s1 + $0x114] sm:$0xf0]  ;;  %v3077_v34 = vld [vmem:[%s5411_s1 + $0x5e8] sm:$0xf]  ;;  %v2326_v35 = vor.u32 %v3412_v19, %v2325_v18  ;;  %v3434_v53 = vld [vmem:[%s5411_s1 + $0xcc] sm:$0xf] }
  0x63   :  { %1362 = vmatpush.bf16.msra.mxu3 %v2962_v0  ;;  %1324 = vmatmul.bf16.vlgmr.msra.gmra.mxu0 %v4050_v20  ;;  %v3484_v0 = vld [vmem:[%s5411_s1 + $0x254] sm:$0xf0]  ;;  %v2454_v40 = vor.u32 %v3444_v25, %v2453_v24  ;;  %v2933_v48 = vld [vmem:[%s5411_s1 + $0x4c8] sm:$0xf]  ;;  %v2423_v54 = vld [vmem:[%s5411_s1 + $0xd8] sm:$0xf0] }
  0x64   :  { %1368 = vmatpush.bf16.msrb.mxu0 %v2438_v3  ;;  %1337 = vmatmul.bf16.vlgmr.msra.gmra.mxu1 %v4052_v21  ;;  %v2741_v3 = vld [vmem:[%s5411_s1 + $0x348] sm:$0xf]  ;;  %v2614_v7 = vor.u32 %v3484_v0, %v2613_v63  ;;  %v3476_v28 = vld [vmem:[%s5411_s1 + $0x214] sm:$0xf0]  ;;  %v2519_v18 = vld [vmem:[%s5411_s1 + $0x198] sm:$0xf0] }
  0x65   :  { %1381 = vmatpush.bf16.msrb.mxu1 %v2566_v4  ;;  %1350 = vmatmul.bf16.vlgmr.msra.gmra.mxu2 %v4188_v32  ;;  %v3516_v4 = vld [vmem:[%s5411_s1 + $0x354] sm:$0xf0]  ;;  %v2582_v41 = vor.u32 %v3476_v28, %v2581_v26  ;;  %v3061_v50 = vld [vmem:[%s5411_s1 + $0x5c8] sm:$0xf] }
  0x66   :  { %1394 = vmatpush.bf16.msrb.mxu2 %v2694_v5  ;;  %1363 = vmatmul.bf16.vlgmr.msra.gmra.mxu3 %v4199_v36  ;;  %v2358_v5 = vor.u32 %v3420_v59, %v2357_v58  ;;  %v2742_v11 = vor.u32 %v3516_v4, %v2741_v3  ;;  %v3568_v33 = vld [vmem:[%s5411_s1 + $0x4f4] sm:$0xf0]  ;;  %v2426_v59 = vor.u32 %v3434_v53, %v2423_v54  ;;  %v2917_v60 = vld [vmem:[%s5411_s1 + $0x4a8] sm:$0xf]  ;;  %v3430_v3 = vld [vmem:[%s5411_s1 + $0xac] sm:$0xf] }
  0x67   :  { %1407 = vmatpush.bf16.msrb.mxu3 %v2822_v9  ;;  %v3416_v9 = vld [vmem:[%s5411_s1 + $0x34] sm:$0xf0]  ;;  %v3045_v62 = vld [vmem:[%s5411_s1 + $0x5a8] sm:$0xf]  ;;  %v2407_v4 = vld [vmem:[%s5411_s1 + $0xb8] sm:$0xf0] }
  0x68   :  { %1369 = vmatpush.bf16.msrb.mxu0 %v2422_v15  ;;  %v2725_v15 = vld [vmem:[%s5411_s1 + $0x328] sm:$0xf]  ;;  %v3596_v52 = vld [vmem:[%s5411_s1 + $0x5d4] sm:$0xf0] }
  0x69   :  { %1382 = vmatpush.bf16.msrb.mxu1 %v2550_v16  ;;  %v3512_v16 = vld [vmem:[%s5411_s1 + $0x334] sm:$0xf0]  ;;  %v3062_v58 = vor.u32 %v3596_v52, %v3061_v50  ;;  %v2901_v10 = vld [vmem:[%s5411_s1 + $0x488] sm:$0xf] }
  0x6a   :  { %1395 = vmatpush.bf16.msrb.mxu2 %v2678_v17  ;;  %v2342_v17 = vor.u32 %v3416_v9, %v2341_v8  ;;  %v2726_v27 = vor.u32 %v3512_v16, %v2725_v15  ;;  %v3592_v0 = vld [vmem:[%s5411_s1 + $0x5b4] sm:$0xf0]  ;;  %v2410_v9 = vor.u32 %v3430_v3, %v2407_v4  ;;  %v3029_v12 = vld [vmem:[%s5411_s1 + $0x588] sm:$0xf]  ;;  %v3426_v15 = vld [vmem:[%s5411_s1 + $0x8c] sm:$0xf] }
  0x6b   :  { %1408 = vmatpush.bf16.msrb.mxu3 %v2806_v23  ;;  %v2598_v23 = vor.u32 %v3480_v14, %v2597_v13  ;;  %v3046_v8 = vor.u32 %v3592_v0, %v3045_v62  ;;  %v3588_v14 = vld [vmem:[%s5411_s1 + $0x594] sm:$0xf0]  ;;  %v2391_v16 = vld [vmem:[%s5411_s1 + $0x98] sm:$0xf0]  ;;  %v2885_v24 = vld [vmem:[%s5411_s1 + $0x468] sm:$0xf] }
  0x6c   :  { %1370 = vmatpush.bf16.msrb.mxu0 %v2406_v29  ;;  %v2709_v29 = vld [vmem:[%s5411_s1 + $0x308] sm:$0xf]  ;;  %v3552_v25 = vld [vmem:[%s5411_s1 + $0x474] sm:$0xf0]  ;;  %v3410_v4 = vld [vmem:[%s5411_s1 + $0xc] sm:$0xf] }
  0x6d   :  { %1383 = vmatpush.bf16.msrb.mxu1 %v2534_v30  ;;  %v3508_v30 = vld [vmem:[%s5411_s1 + $0x314] sm:$0xf0]  ;;  %v3013_v26 = vld [vmem:[%s5411_s1 + $0x568] sm:$0xf] }
  0x6e   :  { %1396 = vmatpush.bf16.msrb.mxu2 %v2662_v31  ;;  %v2949_v31 = vld [vmem:[%s5411_s1 + $0x4e8] sm:$0xf]  ;;  %v3584_v28 = vld [vmem:[%s5411_s1 + $0x574] sm:$0xf0] }
  0x6f   :  { %1409 = vmatpush.bf16.msrb.mxu3 %v2790_v37  ;;  %v3600_v37 = vld [vmem:[%s5411_s1 + $0x5f4] sm:$0xf0]  ;;  %v2869_v38 = vld [vmem:[%s5411_s1 + $0x448] sm:$0xf] }
  0x70   :  { %1371 = vmatpush.bf16.msrb.mxu0 %v2390_v43  ;;  %v2567_v43 = vld [vmem:[%s5411_s1 + $0x1f8] sm:$0xf0]  ;;  %v3078_v46 = vor.u32 %v3600_v37, %v3077_v34  ;;  %v2886_v34 = vor.u32 %v3552_v25, %v2885_v24  ;;  %v3548_v39 = vld [vmem:[%s5411_s1 + $0x454] sm:$0xf0]  ;;  %v2853_v50 = vld [vmem:[%s5411_s1 + $0x428] sm:$0xf] }
  0x71   :  { %1384 = vmatpush.bf16.msrb.mxu1 %v2518_v44  ;;  %v2710_v44 = vor.u32 %v3508_v30, %v2709_v29  ;;  %v2570_v51 = vor.u32 %v3470_v42, %v2567_v43  ;;  %v3422_v29 = vld [vmem:[%s5411_s1 + $0x6c] sm:$0xf]  ;;  %v2375_v30 = vld [vmem:[%s5411_s1 + $0x78] sm:$0xf0]  ;;  %v3580_v42 = vld [vmem:[%s5411_s1 + $0x554] sm:$0xf0] }
  0x72   :  { %1397 = vmatpush.bf16.msrb.mxu2 %v2646_v45  ;;  %v2950_v45 = vor.u32 %v3568_v33, %v2949_v31  ;;  %v3454_v31 = vld [vmem:[%s5411_s1 + $0x16c] sm:$0xf]  ;;  %v2503_v33 = vld [vmem:[%s5411_s1 + $0x178] sm:$0xf0]  ;;  %v2378_v37 = vor.u32 %v3422_v29, %v2375_v30  ;;  %v2981_v52 = vld [vmem:[%s5411_s1 + $0x528] sm:$0xf] }
  0x73   :  { %1410 = vmatpush.bf16.msrb.mxu3 %v2774_v49  ;;  %v3564_v49 = vld [vmem:[%s5411_s1 + $0x4d4] sm:$0xf0]  ;;  %v3418_v43 = vld [vmem:[%s5411_s1 + $0x4c] sm:$0xf]  ;;  %v2965_v0 = vld [vmem:[%s5411_s1 + $0x508] sm:$0xf] }
  0x74   :  { %1372 = vmatpush.bf16.msrb.mxu0 %v2374_v55  ;;  %v3466_v55 = vld [vmem:[%s5411_s1 + $0x1cc] sm:$0xf]  ;;  %v3576_v54 = vld [vmem:[%s5411_s1 + $0x534] sm:$0xf0]  ;;  %v2807_v30 = vld [vmem:[%s5411_s1 + $0x3d8] sm:$0xf0] }
  0x75   :  { %1385 = vmatpush.bf16.msrb.mxu1 %v2502_v56  ;;  %v2551_v56 = vld [vmem:[%s5411_s1 + $0x1d8] sm:$0xf0]  ;;  %v2982_v62 = vor.u32 %v3576_v54, %v2981_v52  ;;  %v3572_v3 = vld [vmem:[%s5411_s1 + $0x514] sm:$0xf0] }
  0x76   :  { %1398 = vmatpush.bf16.msrb.mxu2 %v2630_v57  ;;  %v2934_v57 = vor.u32 %v3564_v49, %v2933_v48  ;;  %v2554_v63 = vor.u32 %v3466_v55, %v2551_v56  ;;  %v3414_v55 = vld [vmem:[%s5411_s1 + $0x2c] sm:$0xf]  ;;  %v2343_v56 = vld [vmem:[%s5411_s1 + $0x38] sm:$0xf0] }
  0x77   :  { %1411 = vmatpush.bf16.msrb.mxu3 %v2758_v61  ;;  %v3560_v61 = vld [vmem:[%s5411_s1 + $0x4b4] sm:$0xf0]  ;;  %v2647_v52 = vld [vmem:[%s5411_s1 + $0x298] sm:$0xf0] }
  0x78   :  { %1373 = vmatpush.bf16.msrb.mxu0 %v2358_v5  ;;  %v3462_v5 = vld [vmem:[%s5411_s1 + $0x1ac] sm:$0xf] }
  0x79   :  { %1386 = vmatpush.bf16.msrb.mxu1 %v2486_v6  ;;  %v2535_v6 = vld [vmem:[%s5411_s1 + $0x1b8] sm:$0xf0] }
  0x7a   :  { %1399 = vmatpush.bf16.msrb.mxu2 %v2614_v7  ;;  %v2918_v7 = vor.u32 %v3560_v61, %v2917_v60  ;;  %v2538_v13 = vor.u32 %v3462_v5, %v2535_v6  ;;  %v2837_v60 = vld [vmem:[%s5411_s1 + $0x408] sm:$0xf]  ;;  %v3540_v61 = vld [vmem:[%s5411_s1 + $0x414] sm:$0xf0]  ;;  %v2327_v6 = vld [vmem:[%s5411_s1 + $0x18] sm:$0xf0] }
  0x7b   :  { %1412 = vmatpush.bf16.msrb.mxu3 %v2742_v11  ;;  %v3556_v11 = vld [vmem:[%s5411_s1 + $0x494] sm:$0xf0] }
  0x7c   :  { %1374 = vmatpush.bf16.msrb.mxu0 %v2342_v17  ;;  %v3458_v17 = vld [vmem:[%s5411_s1 + $0x18c] sm:$0xf]  ;;  %v2902_v19 = vor.u32 %v3556_v11, %v2901_v10  ;;  %v2695_v10 = vld [vmem:[%s5411_s1 + $0x2f8] sm:$0xf0] }
  0x7d   :  { %1387 = vmatpush.bf16.msrb.mxu1 %v2470_v22  ;;  %v3030_v22 = vor.u32 %v3588_v14, %v3029_v12  ;;  %v3534_v11 = vld [vmem:[%s5411_s1 + $0x3ec] sm:$0xf]  ;;  %v2838_v12 = vor.u32 %v3540_v61, %v2837_v60 }
  0x7e   :  { %1400 = vmatpush.bf16.msrb.mxu2 %v2598_v23  ;;  %v2394_v23 = vor.u32 %v3426_v15, %v2391_v16  ;;  %v3566_v14 = vld [vmem:[%s5411_s1 + $0x4ec] sm:$0xf]  ;;  %v2951_v15 = vld [vmem:[%s5411_s1 + $0x4f8] sm:$0xf0]  ;;  %v2966_v16 = vor.u32 %v3572_v3, %v2965_v0 }
  0x7f   :  { %1413 = vmatpush.bf16.msrb.mxu3 %v2726_v27  ;;  %v2522_v27 = vor.u32 %v3458_v17, %v2519_v18  ;;  %v2330_v17 = vor.u32 %v3410_v4, %v2327_v6  ;;  %v3598_v18 = vld [vmem:[%s5411_s1 + $0x5ec] sm:$0xf]  ;;  %v2954_v25 = vor.u32 %v3566_v14, %v2951_v15  ;;  %v2615_v15 = vld [vmem:[%s5411_s1 + $0x258] sm:$0xf0] }
  0x80   :  { %1375 = vmatpush.bf16.msrb.mxu0 %v2326_v35  ;;  %v3014_v35 = vor.u32 %v3584_v28, %v3013_v26  ;;  %v3498_v26 = vld [vmem:[%s5411_s1 + $0x2cc] sm:$0xf] }
  0x81   :  { %1388 = vmatpush.bf16.msrb.mxu1 %v2454_v40  ;;  %v2997_v40 = vld [vmem:[%s5411_s1 + $0x548] sm:$0xf]  ;;  %v3530_v28 = vld [vmem:[%s5411_s1 + $0x3cc] sm:$0xf] }
  0x82   :  { %1401 = vmatpush.bf16.msrb.mxu2 %v2582_v41  ;;  %v2506_v41 = vor.u32 %v3454_v31, %v2503_v33  ;;  %v2998_v48 = vor.u32 %v3580_v42, %v2997_v40  ;;  %v3562_v31 = vld [vmem:[%s5411_s1 + $0x4cc] sm:$0xf]  ;;  %v2935_v33 = vld [vmem:[%s5411_s1 + $0x4d8] sm:$0xf0] }
  0x83   :  { %1414 = vmatpush.bf16.msrb.mxu3 %v2710_v44  ;;  %1376 = vmatmul.bf16.vlgmr.msrb.gmra.mxu0 %v4011_v1  ;;  %v2359_v44 = vld [vmem:[%s5411_s1 + $0x58] sm:$0xf0]  ;;  %v3494_v40 = vld [vmem:[%s5411_s1 + $0x2ac] sm:$0xf] }
  0x84   :  { %1420 = vmatpush.bf16.msra.mxu0 %v2950_v45  ;;  %1389 = vmatmul.bf16.vlgmr.msrb.gmra.mxu1 %v4013_v2  ;;  %v3450_v45 = vld [vmem:[%s5411_s1 + $0x14c] sm:$0xf]  ;;  %v2362_v49 = vor.u32 %v3418_v43, %v2359_v44  ;;  %v2791_v44 = vld [vmem:[%s5411_s1 + $0x3b8] sm:$0xf0] }
  0x85   :  { %1433 = vmatpush.bf16.msra.mxu1 %v3078_v46  ;;  %1402 = vmatmul.bf16.vlgmr.msrb.gmra.mxu2 %v4050_v20  ;;  %v2487_v46 = vld [vmem:[%s5411_s1 + $0x158] sm:$0xf0]  ;;  %v3526_v42 = vld [vmem:[%s5411_s1 + $0x3ac] sm:$0xf] }
  0x86   :  { %1446 = vmatpush.bf16.msra.mxu2 %v2442_v47  ;;  %1415 = vmatmul.bf16.vlgmr.msrb.gmra.mxu3 %v4052_v21  ;;  %v2870_v47 = vor.u32 %v3548_v39, %v2869_v38  ;;  %v2490_v53 = vor.u32 %v3450_v45, %v2487_v46  ;;  %v2810_v38 = vor.u32 %v3530_v28, %v2807_v30  ;;  %v3558_v45 = vld [vmem:[%s5411_s1 + $0x4ac] sm:$0xf]  ;;  %v2919_v46 = vld [vmem:[%s5411_s1 + $0x4b8] sm:$0xf0] }
  0x87   :  { %1459 = vmatpush.bf16.msra.mxu3 %v2570_v51  ;;  %v3544_v51 = vld [vmem:[%s5411_s1 + $0x434] sm:$0xf0]  ;;  %v2938_v39 = vor.u32 %v3562_v31, %v2935_v33  ;;  %v3518_v0 = vld [vmem:[%s5411_s1 + $0x36c] sm:$0xf]  ;;  %v2599_v31 = vld [vmem:[%s5411_s1 + $0x238] sm:$0xf0] }
  0x88   :  { %1421 = vmatpush.bf16.msra.mxu0 %v2934_v57  ;;  %v3446_v57 = vld [vmem:[%s5411_s1 + $0x12c] sm:$0xf] }
  0x89   :  { %1434 = vmatpush.bf16.msra.mxu1 %v3062_v58  ;;  %v2471_v58 = vld [vmem:[%s5411_s1 + $0x138] sm:$0xf0]  ;;  %v3550_v6 = vld [vmem:[%s5411_s1 + $0x46c] sm:$0xf] }
  0x8a   :  { %1447 = vmatpush.bf16.msra.mxu2 %v2426_v59  ;;  %v2854_v59 = vor.u32 %v3544_v51, %v2853_v50  ;;  %v2474_v5 = vor.u32 %v3446_v57, %v2471_v58  ;;  %v2794_v50 = vor.u32 %v3526_v42, %v2791_v44  ;;  %v2922_v51 = vor.u32 %v3558_v45, %v2919_v46  ;;  %v3586_v57 = vld [vmem:[%s5411_s1 + $0x58c] sm:$0xf]  ;;  %v3031_v58 = vld [vmem:[%s5411_s1 + $0x598] sm:$0xf0] }
  0x8b   :  { %1460 = vmatpush.bf16.msra.mxu3 %v2554_v63  ;;  %v2346_v63 = vor.u32 %v3414_v55, %v2343_v56  ;;  %v3554_v55 = vld [vmem:[%s5411_s1 + $0x48c] sm:$0xf]  ;;  %v2903_v56 = vld [vmem:[%s5411_s1 + $0x498] sm:$0xf0]  ;;  %v3034_v4 = vor.u32 %v3586_v57, %v3031_v58  ;;  %v3616_v57 = vld [vmem:[%s5414_s3 + $0x74] sm:$0xf0] }
  0x8c   :  { %1422 = vmatpush.bf16.msra.mxu0 %v2918_v7  ;;  %v3442_v7 = vld [vmem:[%s5411_s1 + $0x10c] sm:$0xf]  ;;  %v2906_v61 = vor.u32 %v3554_v55, %v2903_v56  ;;  %v2967_v55 = vld [vmem:[%s5411_s1 + $0x518] sm:$0xf0]  ;;  %v3145_v56 = vld [vmem:[%s5414_s3 + $0x70] sm:$0xf] }
  0x8d   :  { %1435 = vmatpush.bf16.msra.mxu1 %v3046_v8  ;;  %v2455_v8 = vld [vmem:[%s5411_s1 + $0x118] sm:$0xf0]  ;;  %v3510_v33 = vld [vmem:[%s5411_s1 + $0x32c] sm:$0xf] }
  0x8e   :  { %1448 = vmatpush.bf16.msra.mxu2 %v2410_v9  ;;  %v3502_v9 = vld [vmem:[%s5411_s1 + $0x2ec] sm:$0xf] }
  0x8f   :  { %1461 = vmatpush.bf16.msra.mxu3 %v2538_v13  ;;  %v2823_v13 = vld [vmem:[%s5411_s1 + $0x3f8] sm:$0xf0]  ;;  %v3474_v44 = vld [vmem:[%s5411_s1 + $0x20c] sm:$0xf] }
  0x90   :  { %1423 = vmatpush.bf16.msra.mxu0 %v2902_v19  ;;  %v3079_v19 = vld [vmem:[%s5411_s1 + $0x5f8] sm:$0xf0]  ;;  %v2826_v24 = vor.u32 %v3534_v11, %v2823_v13 }
  0x91   :  { %1436 = vmatpush.bf16.msra.mxu1 %v3030_v22  ;;  %v2458_v22 = vor.u32 %v3442_v7, %v2455_v8  ;;  %v3082_v29 = vor.u32 %v3598_v18, %v3079_v19  ;;  %v2887_v7 = vld [vmem:[%s5411_s1 + $0x478] sm:$0xf0]  ;;  %v3582_v8 = vld [vmem:[%s5411_s1 + $0x56c] sm:$0xf] }
  0x92   :  { %1449 = vmatpush.bf16.msra.mxu2 %v2394_v23  ;;  %v2698_v23 = vor.u32 %v3502_v9, %v2695_v10  ;;  %v3015_v9 = vld [vmem:[%s5411_s1 + $0x578] sm:$0xf0]  ;;  %v2890_v14 = vor.u32 %v3550_v6, %v2887_v7  ;;  %v3546_v19 = vld [vmem:[%s5411_s1 + $0x44c] sm:$0xf] }
  0x93   :  { %1462 = vmatpush.bf16.msra.mxu3 %v2522_v27  ;;  %v2679_v27 = vld [vmem:[%s5411_s1 + $0x2d8] sm:$0xf0]  ;;  %v3018_v18 = vor.u32 %v3582_v8, %v3015_v9  ;;  %v3612_v9 = vld [vmem:[%s5414_s3 + $0x54] sm:$0xf0] }
  0x94   :  { %1424 = vmatpush.bf16.msra.mxu0 %v2886_v34  ;;  %v3594_v34 = vld [vmem:[%s5411_s1 + $0x5cc] sm:$0xf] }
  0x95   :  { %1437 = vmatpush.bf16.msra.mxu1 %v3014_v35  ;;  %v3063_v35 = vld [vmem:[%s5411_s1 + $0x5d8] sm:$0xf0] }
  0x96   :  { %1450 = vmatpush.bf16.msra.mxu2 %v2378_v37  ;;  %v2682_v37 = vor.u32 %v3498_v26, %v2679_v27  ;;  %v3066_v43 = vor.u32 %v3594_v34, %v3063_v35  ;;  %v3478_v27 = vld [vmem:[%s5411_s1 + $0x22c] sm:$0xf] }
  0x97   :  { %1463 = vmatpush.bf16.msra.mxu3 %v2506_v41  ;;  %v2663_v41 = vld [vmem:[%s5411_s1 + $0x2b8] sm:$0xf0] }
  0x98   :  { %1425 = vmatpush.bf16.msra.mxu0 %v2870_v47  ;;  %v3590_v47 = vld [vmem:[%s5411_s1 + $0x5ac] sm:$0xf] }
  0x99   :  { %1438 = vmatpush.bf16.msra.mxu1 %v2998_v48  ;;  %v3047_v48 = vld [vmem:[%s5411_s1 + $0x5b8] sm:$0xf0] }
  0x9a   :  { %1451 = vmatpush.bf16.msra.mxu2 %v2362_v49  ;;  %v2666_v49 = vor.u32 %v3494_v40, %v2663_v41  ;;  %v3050_v54 = vor.u32 %v3590_v47, %v3047_v48  ;;  %v3574_v40 = vld [vmem:[%s5411_s1 + $0x52c] sm:$0xf]  ;;  %v2983_v41 = vld [vmem:[%s5411_s1 + $0x538] sm:$0xf0] }
  0x9b   :  { %1464 = vmatpush.bf16.msra.mxu3 %v2490_v53  ;;  %v3522_v53 = vld [vmem:[%s5411_s1 + $0x38c] sm:$0xf]  ;;  %v2583_v47 = vld [vmem:[%s5411_s1 + $0x218] sm:$0xf0] }
  0x9c   :  { %1426 = vmatpush.bf16.msra.mxu0 %v2854_v59  ;;  %v3506_v48 = vld [vmem:[%s5411_s1 + $0x30c] sm:$0xf]  ;;  %v2586_v58 = vor.u32 %v3474_v44, %v2583_v47  ;;  %v3604_v44 = vld [vmem:[%s5414_s3 + $0x14] sm:$0xf0] }
  0x9d   :  { %1439 = vmatpush.bf16.msra.mxu1 %v2982_v62  ;;  %v3486_v62 = vld [vmem:[%s5411_s1 + $0x26c] sm:$0xf] }
  0x9e   :  { %1452 = vmatpush.bf16.msra.mxu2 %v2346_v63  ;;  %v2631_v63 = vld [vmem:[%s5411_s1 + $0x278] sm:$0xf0] }
  0x9f   :  { %1465 = vmatpush.bf16.msra.mxu3 %v2474_v5  ;;  %v2759_v5 = vld [vmem:[%s5411_s1 + $0x378] sm:$0xf0]  ;;  %v2634_v11 = vor.u32 %v3486_v62, %v2631_v63  ;;  %v3146_v63 = vor.u32 %v3616_v57, %v3145_v56  ;;  %v3622_v57 = vld [vmem:[%s5414_s3 + $0xa4] sm:$0xf0] }
  0xa0   :  { %1427 = vmatpush.bf16.msra.mxu0 %v2838_v12  ;;  %v3482_v12 = vld [vmem:[%s5411_s1 + $0x24c] sm:$0xf]  ;;  %v2762_v13 = vor.u32 %v3518_v0, %v2759_v5  ;;  %v3137_v0 = vld [vmem:[%s5414_s3 + $0x60] sm:$0xf] }
  0xa1   :  { %1440 = vmatpush.bf16.msra.mxu1 %v2966_v16  ;;  %v3514_v16 = vld [vmem:[%s5411_s1 + $0x34c] sm:$0xf]  ;;  %v2618_v26 = vor.u32 %v3482_v12, %v2615_v15  ;;  %v3610_v15 = vld [vmem:[%s5414_s3 + $0x44] sm:$0xf0] }
  0xa2   :  { %1453 = vmatpush.bf16.msra.mxu2 %v2330_v17  ;;  %v2743_v17 = vld [vmem:[%s5411_s1 + $0x358] sm:$0xf0] }
  0xa3   :  { %1466 = vmatpush.bf16.msra.mxu3 %v2458_v22  ;;  %1428 = vmatmul.bf16.vlgmr.msra.gmra.mxu0 %v4188_v32  ;;  %v2871_v22 = vld [vmem:[%s5411_s1 + $0x458] sm:$0xf0]  ;;  %v2746_v28 = vor.u32 %v3514_v16, %v2743_v17 }
  0xa4   :  { %1472 = vmatpush.bf16.msrb.mxu0 %v2698_v23  ;;  %1441 = vmatmul.bf16.vlgmr.msra.gmra.mxu1 %v4199_v36  ;;  %v4894_v23 = vld [vmem:[%s5413_s2] sm:$0xf] }
  0xa5   :  { %1485 = vmatpush.bf16.msrb.mxu1 %v2826_v24  ;;  %1454 = vmatmul.bf16.vlgmr.msra.gmra.mxu2 %v4011_v1  ;;  %v3490_v1 = vld [vmem:[%s5411_s1 + $0x28c] sm:$0xf]  ;;  %v223_v30 = vperm.slane %v4894_v23, 0 }
  0xa6   :  { %1498 = vmatpush.bf16.msrb.mxu2 %v2954_v25  ;;  %1467 = vmatmul.bf16.vlgmr.msra.gmra.mxu3 %v4013_v2  ;;  %v2775_v2 = vld [vmem:[%s5411_s1 + $0x398] sm:$0xf0]  ;;  %v2650_v59 = vor.u32 %v3490_v1, %v2647_v52  ;;  %v3578_v24 = vld [vmem:[%s5411_s1 + $0x54c] sm:$0xf]  ;;  %v2986_v1 = vor.u32 %v3574_v40, %v2983_v41 }
  0xa7   :  { %1511 = vmatpush.bf16.msrb.mxu3 %v3082_v29  ;;  %v2778_v60 = vor.u32 %v3522_v53, %v2775_v2  ;;  %v4856_v3 = vpop.f32.mrf.mxu1  ;;  %v2999_v25 = vld [vmem:[%s5411_s1 + $0x558] sm:$0xf0]  ;;  %v2874_v29 = vor.u32 %v3546_v19, %v2871_v22  ;;  %v3538_v52 = vld [vmem:[%s5411_s1 + $0x40c] sm:$0xf]  ;;  %v3113_v22 = vld [vmem:[%s5414_s3 + $0x30] sm:$0xf] }
  0xa8   :  { %1473 = vmatpush.bf16.msrb.mxu0 %v2682_v37  ;;  %v1221_v10 = vpop.f32.mrf.mxu0  ;;  %v3002_v35 = vor.u32 %v3578_v24, %v2999_v25  ;;  %v2727_v37 = vld [vmem:[%s5411_s1 + $0x338] sm:$0xf0]  ;;  %v3608_v24 = vld [vmem:[%s5414_s3 + $0x34] sm:$0xf0]  ;;  %v3193_v25 = vld [vmem:[%s5414_s3 + $0xd0] sm:$0xf] }
  0xa9   :  { %1486 = vmatpush.bf16.msrb.mxu1 %v2810_v38  ;;  %v3542_v38 = vld [vmem:[%s5411_s1 + $0x42c] sm:$0xf]  ;;  %v2730_v45 = vor.u32 %v3510_v33, %v2727_v37  ;;  %v2839_v53 = vld [vmem:[%s5411_s1 + $0x418] sm:$0xf0]  ;;  %v1260_v2 = vpop.f32.mrf.mxu3  ;;  %v3606_v33 = vld [vmem:[%s5414_s3 + $0x24] sm:$0xf0] }
  0xaa   :  { %1499 = vmatpush.bf16.msrb.mxu2 %v2938_v39  ;;  %v2855_v39 = vld [vmem:[%s5411_s1 + $0x438] sm:$0xf0] }
  0xab   :  { %1512 = vmatpush.bf16.msrb.mxu3 %v3066_v43  ;;  %v2602_v43 = vor.u32 %v3478_v27, %v2599_v31  ;;  %v2858_v46 = vor.u32 %v3542_v38, %v2855_v39  ;;  %v3105_v31 = vld [vmem:[%s5414_s3 + $0x20] sm:$0xf]  ;;  %v3626_v39 = vld [vmem:[%s5414_s3 + $0xc4] sm:$0xf0] }
  0xac   :  { %1474 = vmatpush.bf16.msrb.mxu0 %v2666_v49  ;;  %v2711_v49 = vld [vmem:[%s5411_s1 + $0x318] sm:$0xf0]  ;;  %v3185_v38 = vld [vmem:[%s5414_s3 + $0xc0] sm:$0xf]  ;;  %v3106_v40 = vor.u32 %v3606_v33, %v3105_v31 }
  0xad   :  { %1487 = vmatpush.bf16.msrb.mxu1 %v2794_v50  ;;  %v1247_v50 = vpop.f32.mrf.mxu2 }
  0xae   :  { %1500 = vmatpush.bf16.msrb.mxu2 %v2922_v51  ;;  %v1222_v51 = vadd.f32 %v1221_v10, %v223_v30  ;;  %v3209_v10 = vld [vmem:[%s5414_s3 + $0xf0] sm:$0xf]  ;;  %v3114_v30 = vor.u32 %v3608_v24, %v3113_v22  ;;  %v3629_v24 = vld [vmem:[%s5414_s3 + $0xe4] sm:$0xf] }
  0xaf   :  { %1513 = vmatpush.bf16.msrb.mxu3 %v3050_v54  ;;  %v1236_v34 = vpop.f32.mrf.mxu1  ;;  %v3570_v54 = vld [vmem:[%s5411_s1 + $0x50c] sm:$0xf] }
  0xb0   :  { %1475 = vmatpush.bf16.msrb.mxu0 %v2650_v59  ;;  %v1223_v42 = vpop.f32.mrf.mxu0  ;;  %v2714_v59 = vor.u32 %v3506_v48, %v2711_v49  ;;  %v2970_v62 = vor.u32 %v3570_v54, %v2967_v55  ;;  %v3169_v55 = vld [vmem:[%s5414_s3 + $0xa0] sm:$0xf] }
  0xb1   :  { %1488 = vmatpush.bf16.msrb.mxu1 %v2778_v60  ;;  %v2842_v60 = vor.u32 %v3538_v52, %v2839_v53  ;;  %v1262_v8 = vpop.f32.mrf.mxu3  ;;  %v3186_v42 = vor.u32 %v3626_v39, %v3185_v38  ;;  %v3615_v52 = vld [vmem:[%s5414_s3 + $0x74] sm:$0xf]  ;;  %v3147_v53 = vld [vmem:[%s5414_s3 + $0x78] sm:$0xf0] }
  0xb2   :  { %1501 = vmatpush.bf16.msrb.mxu2 %v2906_v61  ;;  %v1235_v61 = vadd.f32 %v4856_v3, %v1222_v51  ;;  %v3129_v3 = vld [vmem:[%s5414_s3 + $0x50] sm:$0xf]  ;;  %v3089_v51 = vld [vmem:[%s5414_s3] sm:$0xf]  ;;  %v3131_v8 = vld [vmem:[%s5414_s3 + $0x58] sm:$0xf0] }
  0xb3   :  { %1514 = vmatpush.bf16.msrb.mxu3 %v3034_v4  ;;  %v3614_v4 = vld [vmem:[%s5414_s3 + $0x64] sm:$0xf0] }
  0xb4   :  { %1476 = vmatpush.bf16.msrb.mxu0 %v2634_v11  ;;  %v3138_v6 = vor.u32 %v3614_v4, %v3137_v0  ;;  %v1248_v7 = vadd.f32 %v1247_v50, %v1235_v61  ;;  %v3632_v11 = vld [vmem:[%s5414_s3 + $0xf4] sm:$0xf0]  ;;  %v3139_v61 = vld [vmem:[%s5414_s3 + $0x68] sm:$0xf0] }
  0xb5   :  { %1489 = vmatpush.bf16.msrb.mxu1 %v2762_v13  ;;  %v1249_v5 = vpop.f32.mrf.mxu2  ;;  %v3210_v12 = vor.u32 %v3632_v11, %v3209_v10  ;;  %v3130_v13 = vor.u32 %v3612_v9, %v3129_v3  ;;  %v3620_v0 = vld [vmem:[%s5414_s3 + $0x94] sm:$0xf0]  ;;  %v3611_v3 = vld [vmem:[%s5414_s3 + $0x54] sm:$0xf]  ;;  %v3153_v10 = vld [vmem:[%s5414_s3 + $0x80] sm:$0xf] }
  0xb6   :  { %1502 = vmatpush.bf16.msrb.mxu2 %v2890_v14  ;;  %v3121_v14 = vld [vmem:[%s5414_s3 + $0x40] sm:$0xf]  ;;  %v3618_v11 = vld [vmem:[%s5414_s3 + $0x84] sm:$0xf0] }
  0xb7   :  { %1515 = vmatpush.bf16.msrb.mxu3 %v3018_v18  ;;  %v3122_v19 = vor.u32 %v3610_v15, %v3121_v14  ;;  %v3211_v14 = vld [vmem:[%s5414_s3 + $0xf8] sm:$0xf0]  ;;  %v3134_v15 = vor.u32 %v3611_v3, %v3131_v8  ;;  %v3091_v3 = vld [vmem:[%s5414_s3 + $0x8] sm:$0xf0] }
  0xb8   :  { %1477 = vmatpush.bf16.msrb.mxu0 %v2618_v26  ;;  %v3628_v26 = vld [vmem:[%s5414_s3 + $0xd4] sm:$0xf0] }
  0xb9   :  { %1490 = vmatpush.bf16.msrb.mxu1 %v2746_v28  ;;  %v3194_v28 = vor.u32 %v3628_v26, %v3193_v25  ;;  %v3203_v25 = vld [vmem:[%s5414_s3 + $0xe8] sm:$0xf0] }
  0xba   :  { %1503 = vmatpush.bf16.msrb.mxu2 %v2874_v29 }
  0xbb   :  { %1516 = vmatpush.bf16.msrb.mxu3 %v3002_v35 }
  0xbc   :  { %1478 = vmatpush.bf16.msrb.mxu0 %v2602_v43  ;;  %v3097_v43 = vld [vmem:[%s5414_s3 + $0x10] sm:$0xf] }
  0xbd   :  { %1491 = vmatpush.bf16.msrb.mxu1 %v2730_v45  ;;  %v3177_v45 = vld [vmem:[%s5414_s3 + $0xb0] sm:$0xf]  ;;  %v3098_v48 = vor.u32 %v3604_v44, %v3097_v43  ;;  %v3625_v44 = vld [vmem:[%s5414_s3 + $0xc4] sm:$0xf] }
  0xbe   :  { %1504 = vmatpush.bf16.msrb.mxu2 %v2858_v46  ;;  %v3624_v46 = vld [vmem:[%s5414_s3 + $0xb4] sm:$0xf0] }
  0xbf   :  { %1517 = vmatpush.bf16.msrb.mxu3 %v2986_v1  ;;  %v3178_v49 = vor.u32 %v3624_v46, %v3177_v45  ;;  %v3602_v1 = vld [vmem:[%s5414_s3 + $0x4] sm:$0xf0]  ;;  %v3187_v45 = vld [vmem:[%s5414_s3 + $0xc8] sm:$0xf0]  ;;  %v3605_v46 = vld [vmem:[%s5414_s3 + $0x24] sm:$0xf] }
  0xc0   :  { %1479 = vmatpush.bf16.msrb.mxu0 %v2586_v58  ;;  %v1273_v16 = vpop.f32.mrf.mxu0  ;;  %v3090_v56 = vor.u32 %v3602_v1, %v3089_v51  ;;  %v3150_v58 = vor.u32 %v3615_v52, %v3147_v53  ;;  %v3190_v51 = vor.u32 %v3625_v44, %v3187_v45  ;;  %v3603_v52 = vld [vmem:[%s5414_s3 + $0x14] sm:$0xf] }
  0xc1   :  { %1492 = vmatpush.bf16.msrb.mxu1 %v2714_v59  ;;  %v1286_v18 = vpop.f32.mrf.mxu1  ;;  %v3170_v59 = vor.u32 %v3622_v57, %v3169_v55  ;;  %v3623_v55 = vld [vmem:[%s5414_s3 + $0xb4] sm:$0xf] }
  0xc2   :  { %1505 = vmatpush.bf16.msrb.mxu2 %v2842_v60  ;;  %v3613_v60 = vld [vmem:[%s5414_s3 + $0x64] sm:$0xf] }
  0xc3   :  { %1518 = vmatpush.bf16.msrb.mxu3 %v2970_v62  ;;  %1480 = vmatmul.bf16.vlgmr.msrb.gmra.mxu0 %v4050_v20  ;;  %v1261_v20 = vadd.f32 %v1260_v2, %v1248_v7  ;;  %v224_v62 = vperm.slane %v4894_v23, 1 }
  0xc4   :  { %1994 = vmatpush.bf16.msra.mxu0 %v3146_v63  ;;  %1493 = vmatmul.bf16.vlgmr.msrb.gmra.mxu1 %v4052_v21  ;;  %v3201_v21 = vld [vmem:[%s5414_s3 + $0xe0] sm:$0xf]  ;;  %v3161_v63 = vld [vmem:[%s5414_s3 + $0x90] sm:$0xf] }
  0xc5   :  { %1506 = vmatmul.bf16.vlgmr.msrb.gmra.mxu2 %v4188_v32  ;;  %2007 = vmatpush.bf16.msra.mxu1 %v3210_v12  ;;  %v3630_v32 = vld [vmem:[%s5414_s3 + $0xe4] sm:$0xf0]  ;;  %v1274_v17 = vadd.f32 %v1273_v16, %v1261_v20  ;;  %v3162_v4 = vor.u32 %v3620_v0, %v3161_v63  ;;  %v3154_v20 = vor.u32 %v3618_v11, %v3153_v10  ;;  %v3123_v16 = vld [vmem:[%s5414_s3 + $0x48] sm:$0xf0] }
  0xc6   :  { %1519 = vmatmul.bf16.vlgmr.msrb.gmra.mxu3 %v4199_v36  ;;  %v3202_v36 = vor.u32 %v3630_v32, %v3201_v21  ;;  %v3171_v0 = vld [vmem:[%s5414_s3 + $0xa8] sm:$0xf0] }
  0xc7   :  { %v1287_v27 = vadd.f32 %v1286_v18, %v1274_v17 }
  0xc8   :  { %1995 = vmatpush.bf16.msra.mxu0 %v3138_v6  ;;  %v1299_v34 = vpop.f32.mrf.mxu2  ;;  %v1275_v37 = vpop.f32.mrf.mxu0  ;;  %v3142_v6 = vor.u32 %v3613_v60, %v3139_v61  ;;  %v3621_v61 = vld [vmem:[%s5414_s3 + $0xa4] sm:$0xf] }
  0xc9   :  { %2008 = vmatpush.bf16.msra.mxu1 %v3202_v36  ;;  %v3083_v29 = vmul.f32 -1.442695, %v1287_v27  ;;  %v5010_v35 = vpop.f32.mrf.mxu3  ;;  %v1288_v41 = vpop.f32.mrf.mxu1  ;;  %v1300_v9 = vadd.f32 %v1299_v34, %v224_v62  ;;  %v3609_v36 = vld [vmem:[%s5414_s3 + $0x44] sm:$0xf]  ;;  %v3607_v34 = vld [vmem:[%s5414_s3 + $0x34] sm:$0xf]  ;;  %v3174_v11 = vor.u32 %v3621_v61, %v3171_v0 }
  0xca   :  { %v3126_v26 = vor.u32 %v3609_v36, %v3123_v16  ;;  %v3648_v62 = vld [vmem:[%s5414_s3 + $0x174] sm:$0xf0]  ;;  %v3267_v0 = vld [vmem:[%s5414_s3 + $0x168] sm:$0xf0] }
  0xcb   :  { %3682 = vpow2.f32 %v3083_v29  ;;  %v3627_v29 = vld [vmem:[%s5414_s3 + $0xd4] sm:$0xf] }
  0xcc   :  { %1996 = vmatpush.bf16.msra.mxu0 %v3130_v13  ;;  %v3631_v13 = vld [vmem:[%s5414_s3 + $0xf4] sm:$0xf] }
  0xcd   :  { %2009 = vmatpush.bf16.msra.mxu1 %v3194_v28  ;;  %v3214_v32 = vor.u32 %v3631_v13, %v3211_v14  ;;  %v3206_v28 = vor.u32 %v3629_v24, %v3203_v25  ;;  %v3619_v14 = vld [vmem:[%s5414_s3 + $0x94] sm:$0xf] }
  0xd0   :  { %1997 = vmatpush.bf16.msra.mxu0 %v3122_v19  ;;  %v1301_v54 = vpop.f32.mrf.mxu2  ;;  %v1313_v19 = vadd.f32 %v5010_v35, %v1300_v9  ;;  %v3115_v35 = vld [vmem:[%s5414_s3 + $0x38] sm:$0xf0] }
  0xd1   :  { %2010 = vmatpush.bf16.msra.mxu1 %v3186_v42  ;;  %v3683_v47 = vpop.eup %3682  ;;  %v1314_v2 = vpop.f32.mrf.mxu3  ;;  %v3118_v43 = vor.u32 %v3607_v34, %v3115_v35  ;;  %v3099_v54 = vld [vmem:[%s5414_s3 + $0x18] sm:$0xf0]  ;;  %v3241_v35 = vld [vmem:[%s5414_s3 + $0x130] sm:$0xf] }
  0xd2   :  { %v5030_v50 = vadd.f32 1.0, %v3683_v47  ;;  %v3107_v47 = vld [vmem:[%s5414_s3 + $0x28] sm:$0xf0]  ;;  %v3102_v63 = vor.u32 %v3603_v52, %v3099_v54  ;;  %v3636_v52 = vld [vmem:[%s5414_s3 + $0x114] sm:$0xf0] }
  0xd3   :  { %v3110_v1 = vor.u32 %v3605_v46, %v3107_v47  ;;  %v3233_v46 = vld [vmem:[%s5414_s3 + $0x120] sm:$0xf]  ;;  %v3638_v47 = vld [vmem:[%s5414_s3 + $0x124] sm:$0xf0] }
  0xd4   :  { %1998 = vmatpush.bf16.msra.mxu0 %v3114_v30  ;;  %3684 = vrcp.f32 %v5030_v50  ;;  %v1551_v21 = vand.u32 2147483648, %v5030_v50  ;;  %vm1545_vm0 = vweird.f32 %v5030_v50  ;;  %v1549_v18 = vand.u32 2147483647, %v5030_v50  ;;  %v3195_v30 = vld [vmem:[%s5414_s3 + $0xd8] sm:$0xf0] }
  0xd5   :  { %2011 = vmatpush.bf16.msra.mxu1 %v3178_v49  ;;  %v3198_v41 = vor.u32 %v3627_v29, %v3195_v30 }
  0xd6   :  { %v1552_v27 = vor.u32 1.1754944e-38, %v1551_v21  ;;  %vm1550_vm3 = vcmp.eq.f32.partialorder %v1549_v18, 8.507059e+37  ;;  %v3155_v18 = vld [vmem:[%s5414_s3 + $0x88] sm:$0xf0] }
  0xd8   :  { %1999 = vmatpush.bf16.msra.mxu0 %v3106_v40 }
  0xd9   :  { %2012 = vmatpush.bf16.msra.mxu1 %v3170_v59 }
  0xda   :  { %v3685_v5 = vpop.eup %3684 }
  0xdb   :  { %v1541_v7 = vmul.f32 %v3685_v5, %v5030_v50  ;;  %vm1546_vm1 = vweird.f32 %v3685_v5 }
  0xdc   :  { %2000 = vmatpush.bf16.msra.mxu0 %v3098_v48  ;;  %vm1547_vm2 = vmor %vm1545_vm0, %vm1546_vm1 }
  0xdd   :  { %2013 = vmatpush.bf16.msra.mxu1 %v3162_v4  ;;  %v1542_v12 = vsub.f32 1.0, %v1541_v7  ;;  %v3601_v7 = vld [vmem:[%s5414_s3 + $0x4] sm:$0xf] }
  0xde   :  { %v3094_v13 = vor.u32 %v3601_v7, %v3091_v3  ;;  %v3664_v7 = vld [vmem:[%s5414_s3 + $0x1f4] sm:$0xf0]  ;;  %v3643_v3 = vld [vmem:[%s5414_s3 + $0x154] sm:$0xf] }
  0xdf   :  { %v1543_v17 = vmul.f32 %v3685_v5, %v1542_v12  ;;  %v3257_v12 = vld [vmem:[%s5414_s3 + $0x150] sm:$0xf] }
  0xe0   :  { %2001 = vmatpush.bf16.msra.mxu0 %v3090_v56  ;;  %v1325_v31 = vpop.f32.mrf.mxu0  ;;  %v3179_v56 = vld [vmem:[%s5414_s3 + $0xb8] sm:$0xf0] }
  0xe1   :  { %2014 = vmatpush.bf16.msra.mxu1 %v3154_v20  ;;  %v1544_v22 = vadd.f32 %v3685_v5, %v1543_v17  ;;  %v1326_v37 = vadd.f32 %v1325_v31, %v1313_v19  ;;  %v1338_v38 = vpop.f32.mrf.mxu1  ;;  %v3182_v60 = vor.u32 %v3623_v55, %v3179_v56  ;;  %v3644_v20 = vld [vmem:[%s5414_s3 + $0x154] sm:$0xf0]  ;;  %v3617_v17 = vld [vmem:[%s5414_s3 + $0x84] sm:$0xf]  ;;  %v3217_v56 = vld [vmem:[%s5414_s3 + $0x100] sm:$0xf] }
  0xe2   :  { %v3258_v21 = vor.u32 %v3644_v20, %v3257_v12  ;;  %v3158_v19 = vor.u32 %v3617_v17, %v3155_v18  ;;  %v3329_v12 = vld [vmem:[%s5414_s3 + $0x1e0] sm:$0xf]  ;;  %v3662_v20 = vld [vmem:[%s5414_s3 + $0x1e4] sm:$0xf0] }
  0xe3   :  { %v1548_v33 = vsel %vm1547_vm2, %v3685_v5, %v1544_v22  ;;  %v1339_v42 = vadd.f32 %v1338_v38, %v1326_v37  ;;  %v3265_v5 = vld [vmem:[%s5414_s3 + $0x160] sm:$0xf]  ;;  %v3640_v37 = vld [vmem:[%s5414_s3 + $0x134] sm:$0xf0] }
  0xe4   :  { %2046 = vmatpush.bf16.msrb.mxu0 %v3150_v58  ;;  %v1553_v39 = vsel %vm1550_vm3, %v1552_v27, %v1548_v33  ;;  %v3273_v58 = vld [vmem:[%s5414_s3 + $0x170] sm:$0xf]  ;;  %v3642_v27 = vld [vmem:[%s5414_s3 + $0x144] sm:$0xf0] }
  0xe5   :  { %2059 = vmatpush.bf16.msrb.mxu1 %v3214_v32  ;;  %v1600_v40 = vpack.c.bf16 %v1553_v39, %v1553_v39  ;;  %v3274_v4 = vor.u32 %v3648_v62, %v3273_v58  ;;  %v3242_v39 = vor.u32 %v3640_v37, %v3241_v35 }
  0xe7   :  { %2002 = vmatmul.bf16.vlgmr.msra.gmra.mxu0 %v1600_v40  ;;  %2020 = vmatpush.bf16.msra.mxu2 %v3274_v4 }
  0xe8   :  { %2047 = vmatpush.bf16.msrb.mxu0 %v3142_v6  ;;  %v1351_v48 = vpop.f32.mrf.mxu2  ;;  %v1327_v2 = vpop.f32.mrf.mxu0  ;;  %v3646_v6 = vld [vmem:[%s5414_s3 + $0x164] sm:$0xf0] }
  0xe9   :  { %2060 = vmatpush.bf16.msrb.mxu1 %v3206_v28  ;;  %v1352_v49 = vadd.f32 %v1351_v48, %v1339_v42  ;;  %v1364_v50 = vpop.f32.mrf.mxu3  ;;  %v1340_v57 = vpop.f32.mrf.mxu1  ;;  %v3266_v9 = vor.u32 %v3646_v6, %v3265_v5  ;;  %v3337_v6 = vld [vmem:[%s5414_s3 + $0x1f0] sm:$0xf] }
  0xea   :  { %v3634_v57 = vld [vmem:[%s5414_s3 + $0x104] sm:$0xf0] }
  0xeb   :  { %v1365_v53 = vadd.f32 %v1364_v50, %v1352_v49  ;;  %2021 = vmatpush.bf16.msra.mxu2 %v3266_v9  ;;  %v3234_v50 = vor.u32 %v3638_v47, %v3233_v46  ;;  %v3218_v58 = vor.u32 %v3634_v57, %v3217_v56  ;;  %v3259_v9 = vld [vmem:[%s5414_s3 + $0x158] sm:$0xf0]  ;;  %v3297_v47 = vld [vmem:[%s5414_s3 + $0x1a0] sm:$0xf]  ;;  %v226_v57 = vperm.slane %v4894_v23, 3 }
  0xec   :  { %2048 = vmatpush.bf16.msrb.mxu0 %v3134_v15  ;;  %v3163_v15 = vld [vmem:[%s5414_s3 + $0x98] sm:$0xf0] }
  0xed   :  { %2061 = vmatpush.bf16.msrb.mxu1 %v3198_v41  ;;  %v3084_v59 = vmul.f32 -1.442695, %v1365_v53  ;;  %v3166_v36 = vor.u32 %v3619_v14, %v3163_v15  ;;  %v3641_v14 = vld [vmem:[%s5414_s3 + $0x144] sm:$0xf]  ;;  %v3251_v15 = vld [vmem:[%s5414_s3 + $0x148] sm:$0xf0] }
  0xef   :  { %3686 = vpow2.f32 %v3084_v59  ;;  %2022 = vmatpush.bf16.msra.mxu2 %v3258_v21  ;;  %v3647_v59 = vld [vmem:[%s5414_s3 + $0x174] sm:$0xf] }
  0xf0   :  { %2049 = vmatpush.bf16.msrb.mxu0 %v3126_v26  ;;  %v1353_v8 = vpop.f32.mrf.mxu2  ;;  %v3249_v26 = vld [vmem:[%s5414_s3 + $0x140] sm:$0xf] }
  0xf1   :  { %2062 = vmatpush.bf16.msrb.mxu1 %v3190_v51  ;;  %v1366_v10 = vpop.f32.mrf.mxu3  ;;  %v3250_v30 = vor.u32 %v3642_v27, %v3249_v26  ;;  %v225_v51 = vperm.slane %v4894_v23, 2  ;;  %v3338_v8 = vor.u32 %v3664_v7, %v3337_v6  ;;  %v3661_v7 = vld [vmem:[%s5414_s3 + $0x1e4] sm:$0xf] }
  0xf2   :  { %v3262_v10 = vor.u32 %v3643_v3, %v3259_v9  ;;  %v3331_v3 = vld [vmem:[%s5414_s3 + $0x1e8] sm:$0xf0] }
  0xf3   :  { %2023 = vmatpush.bf16.msra.mxu2 %v3250_v30  ;;  %2033 = vmatpush.bf16.msra.mxu3 %v3338_v8 }
  0xf4   :  { %2050 = vmatpush.bf16.msrb.mxu0 %v3118_v43 }
  0xf5   :  { %2063 = vmatpush.bf16.msrb.mxu1 %v3182_v60  ;;  %v3687_v32 = vpop.eup %3686  ;;  %v3275_v60 = vld [vmem:[%s5414_s3 + $0x178] sm:$0xf0] }
  0xf6   :  { %v1537_v16 = vadd.f32 1.0, %v3687_v32  ;;  %v3278_v61 = vor.u32 %v3647_v59, %v3275_v60  ;;  %v3254_v32 = vor.u32 %v3641_v14, %v3251_v15  ;;  %v3650_v59 = vld [vmem:[%s5414_s3 + $0x184] sm:$0xf0]  ;;  %v3323_v14 = vld [vmem:[%s5414_s3 + $0x1d8] sm:$0xf0] }
  0xf7   :  { %2024 = vmatpush.bf16.msra.mxu2 %v3242_v39 }
  0xf8   :  { %2051 = vmatpush.bf16.msrb.mxu0 %v3110_v1  ;;  %3688 = vrcp.f32 %v1537_v16  ;;  %v1566_v31 = vand.u32 2147483648, %v1537_v16  ;;  %vm1560_vm4 = vweird.f32 %v1537_v16  ;;  %v1564_v34 = vand.u32 2147483647, %v1537_v16  ;;  %v3225_v1 = vld [vmem:[%s5414_s3 + $0x110] sm:$0xf] }
  0xf9   :  { %2064 = vmatpush.bf16.msrb.mxu1 %v3174_v11  ;;  %v3226_v53 = vor.u32 %v3636_v52, %v3225_v1  ;;  %v3633_v1 = vld [vmem:[%s5414_s3 + $0x104] sm:$0xf]  ;;  %v3219_v52 = vld [vmem:[%s5414_s3 + $0x108] sm:$0xf0] }
  0xfa   :  { %vm1565_vm7 = vcmp.eq.f32.partialorder %v1564_v34, 8.507059e+37  ;;  %v3235_v34 = vld [vmem:[%s5414_s3 + $0x128] sm:$0xf0] }
  0xfb   :  { %2025 = vmatpush.bf16.msra.mxu2 %v3234_v50 }
  0xfc   :  { %2052 = vmatpush.bf16.msrb.mxu0 %v3102_v63  ;;  %v3645_v63 = vld [vmem:[%s5414_s3 + $0x164] sm:$0xf] }
  0xfd   :  { %2065 = vmatpush.bf16.msrb.mxu1 %v3166_v36  ;;  %v3270_v4 = vor.u32 %v3645_v63, %v3267_v0  ;;  %v3321_v36 = vld [vmem:[%s5414_s3 + $0x1d0] sm:$0xf]  ;;  %v3339_v63 = vld [vmem:[%s5414_s3 + $0x1f8] sm:$0xf0] }
  0xfe   :  { %v3689_v22 = vpop.eup %3688 }
  0xff   :  { %v1556_v24 = vmul.f32 %v3689_v22, %v1537_v16  ;;  %vm1561_vm5 = vweird.f32 %v3689_v22  ;;  %2026 = vmatpush.bf16.msra.mxu2 %v3226_v53  ;;  %v3660_v16 = vld [vmem:[%s5414_s3 + $0x1d4] sm:$0xf0] }
 0x100   :  { %2053 = vmatpush.bf16.msrb.mxu0 %v3094_v13  ;;  %v1377_v25 = vpop.f32.mrf.mxu0  ;;  %vm1562_vm6 = vmor %vm1560_vm4, %vm1561_vm5  ;;  %v3330_v13 = vor.u32 %v3662_v20, %v3329_v12 }
 0x101   :  { %2066 = vmatpush.bf16.msrb.mxu1 %v3158_v19  ;;  %v1557_v28 = vsub.f32 1.0, %v1556_v24  ;;  %v1390_v29 = vpop.f32.mrf.mxu1  ;;  %v1378_v54 = vadd.f32 %v1377_v25, %v225_v51  ;;  %v3322_v19 = vor.u32 %v3660_v16, %v3321_v36  ;;  %v3639_v24 = vld [vmem:[%s5414_s3 + $0x134] sm:$0xf]  ;;  %v3243_v25 = vld [vmem:[%s5414_s3 + $0x138] sm:$0xf0] }
 0x102   :  { %2034 = vmatpush.bf16.msra.mxu3 %v3330_v13  ;;  %v3246_v26 = vor.u32 %v3639_v24, %v3243_v25  ;;  %v3659_v13 = vld [vmem:[%s5414_s3 + $0x1d4] sm:$0xf]  ;;  %v3657_v36 = vld [vmem:[%s5414_s3 + $0x1c4] sm:$0xf]  ;;  %v3315_v16 = vld [vmem:[%s5414_s3 + $0x1c8] sm:$0xf0] }
 0x103   :  { %2054 = vmatmul.bf16.vlgmr.msrb.gmra.mxu0 %v1600_v40  ;;  %v1558_v33 = vmul.f32 %v3689_v22, %v1557_v28  ;;  %v1567_v40 = vor.u32 1.1754944e-38, %v1566_v31  ;;  %v1391_v62 = vadd.f32 %v1390_v29, %v1378_v54  ;;  %2027 = vmatpush.bf16.msra.mxu2 %v3218_v58  ;;  %v3313_v28 = vld [vmem:[%s5414_s3 + $0x1c0] sm:$0xf]  ;;  %v3658_v29 = vld [vmem:[%s5414_s3 + $0x1c4] sm:$0xf0]  ;;  %v3222_v54 = vor.u32 %v3633_v1, %v3219_v52 }
 0x104   :  { %v3314_v30 = vor.u32 %v3658_v29, %v3313_v28  ;;  %v3281_v58 = vld [vmem:[%s5414_s3 + $0x180] sm:$0xf]  ;;  %v3318_v24 = vor.u32 %v3657_v36, %v3315_v16  ;;  %v3668_v36 = vld [vmem:[%s5417_s5 + $0x18] sm:$0xff] }
 0x105   :  { %v1559_v38 = vadd.f32 %v3689_v22, %v1558_v33  ;;  %v3637_v33 = vld [vmem:[%s5414_s3 + $0x124] sm:$0xf]  ;;  %v3680_v16 = vld [vmem:[%s5417_s5 + $0x78] sm:$0xff] }
 0x106   :  { %2035 = vmatpush.bf16.msra.mxu3 %v3322_v19 }
 0x107   :  { %v1563_v41 = vsel %vm1562_vm6, %v3689_v22, %v1559_v38  ;;  %2072 = vmatpush.bf16.msrb.mxu2 %v3278_v61  ;;  %v3238_v38 = vor.u32 %v3637_v33, %v3235_v34  ;;  %v3282_v61 = vor.u32 %v3650_v59, %v3281_v58  ;;  %v3307_v33 = vld [vmem:[%s5414_s3 + $0x1b8] sm:$0xf0] }
 0x108   :  { %v1403_v42 = vpop.f32.mrf.mxu2  ;;  %v1568_v43 = vsel %vm1565_vm7, %v1567_v40, %v1563_v41  ;;  %v1379_v44 = vpop.f32.mrf.mxu0  ;;  %v3305_v40 = vld [vmem:[%s5414_s3 + $0x1b0] sm:$0xf]  ;;  %v3656_v41 = vld [vmem:[%s5414_s3 + $0x1b4] sm:$0xf0] }
 0x109   :  { %v1416_v45 = vpop.f32.mrf.mxu3  ;;  %v1601_v48 = vpack.c.bf16 %v1568_v43, %v1568_v43  ;;  %v1392_v49 = vpop.f32.mrf.mxu1  ;;  %v1404_v5 = vadd.f32 %v1403_v42, %v1391_v62  ;;  %v3306_v42 = vor.u32 %v3656_v41, %v3305_v40  ;;  %v3635_v43 = vld [vmem:[%s5414_s3 + $0x114] sm:$0xf]  ;;  %v3227_v44 = vld [vmem:[%s5414_s3 + $0x118] sm:$0xf0] }
 0x10a   :  { %2036 = vmatpush.bf16.msra.mxu3 %v3314_v30  ;;  %v3663_v62 = vld [vmem:[%s5414_s3 + $0x1f4] sm:$0xf] }
 0x10b   :  { %2015 = vmatmul.bf16.vlgmr.msra.gmra.mxu1 %v1601_v48  ;;  %2073 = vmatpush.bf16.msrb.mxu2 %v3270_v4  ;;  %v1417_v11 = vadd.f32 %v1416_v45, %v1404_v5  ;;  %v3230_v45 = vor.u32 %v3635_v43, %v3227_v44  ;;  %v3342_v23 = vor.u32 %v3663_v62, %v3339_v63  ;;  %v3651_v41 = vld [vmem:[%s5414_s3 + $0x194] sm:$0xf] }
 0x10c   :  { %2283 = vmatpush.bf16.msra.mxu1 %v3680_v16 }
 0x10e   :  { %2037 = vmatpush.bf16.msra.mxu3 %v3306_v42  ;;  %v3291_v42 = vld [vmem:[%s5414_s3 + $0x198] sm:$0xf0] }
 0x10f   :  { %2074 = vmatpush.bf16.msrb.mxu2 %v3262_v10  ;;  %v3334_v10 = vor.u32 %v3661_v7, %v3331_v3 }
 0x110   :  { %v1405_v2 = vpop.f32.mrf.mxu2 }
 0x111   :  { %v1418_v55 = vpop.f32.mrf.mxu3  ;;  %v3289_v2 = vld [vmem:[%s5414_s3 + $0x190] sm:$0xf] }
 0x112   :  { %v3652_v55 = vld [vmem:[%s5414_s3 + $0x194] sm:$0xf0] }
 0x113   :  { %2075 = vmatpush.bf16.msrb.mxu2 %v3254_v32  ;;  %v3290_v56 = vor.u32 %v3652_v55, %v3289_v2  ;;  %v3326_v32 = vor.u32 %v3659_v13, %v3323_v14  ;;  %v3671_v14 = vld [vmem:[%s5417_s5 + $0x30] sm:$0xff] }
 0x117   :  { %2076 = vmatpush.bf16.msrb.mxu2 %v3246_v26 }
 0x11b   :  { %2067 = vmatmul.bf16.vlgmr.msrb.gmra.mxu1 %v1601_v48  ;;  %2077 = vmatpush.bf16.msrb.mxu2 %v3238_v38  ;;  %v3654_v48 = vld [vmem:[%s5414_s3 + $0x1a4] sm:$0xf0]  ;;  %v3299_v38 = vld [vmem:[%s5414_s3 + $0x1a8] sm:$0xf0] }
 0x11c   :  { %v3298_v50 = vor.u32 %v3654_v48, %v3297_v47  ;;  %v3283_v47 = vld [vmem:[%s5414_s3 + $0x188] sm:$0xf0] }
 0x11e   :  { %2038 = vmatpush.bf16.msra.mxu3 %v3298_v50 }
 0x11f   :  { %2078 = vmatpush.bf16.msrb.mxu2 %v3230_v45  ;;  %v3294_v45 = vor.u32 %v3651_v41, %v3291_v42 }
 0x120   :  { %v1429_v21 = vpop.f32.mrf.mxu0 }
 0x121   :  { %v1430_v17 = vadd.f32 %v1429_v21, %v1417_v11  ;;  %v1442_v18 = vpop.f32.mrf.mxu1 }
 0x122   :  { %2039 = vmatpush.bf16.msra.mxu3 %v3290_v56 }
 0x123   :  { %v1443_v22 = vadd.f32 %v1442_v18, %v1430_v17  ;;  %2079 = vmatpush.bf16.msrb.mxu2 %v3222_v54 }
 0x125   :  { %v3085_v27 = vmul.f32 -1.442695, %v1443_v22 }
 0x126   :  { %2040 = vmatpush.bf16.msra.mxu3 %v3282_v61 }
 0x127   :  { %3690 = vpow2.f32 %v3085_v27 }
 0x128   :  { %v1455_v31 = vpop.f32.mrf.mxu2  ;;  %v1431_v37 = vpop.f32.mrf.mxu0 }
 0x129   :  { %v1468_v35 = vpop.f32.mrf.mxu3  ;;  %v1444_v39 = vpop.f32.mrf.mxu1  ;;  %v1456_v5 = vadd.f32 %v1455_v31, %v226_v57  ;;  %v3655_v31 = vld [vmem:[%s5414_s3 + $0x1b4] sm:$0xf]  ;;  %v3653_v37 = vld [vmem:[%s5414_s3 + $0x1a4] sm:$0xf] }
 0x12a   :  { %2085 = vmatpush.bf16.msrb.mxu3 %v3342_v23  ;;  %v3302_v40 = vor.u32 %v3653_v37, %v3299_v38  ;;  %v3673_v38 = vld [vmem:[%s5417_s5 + $0x40] sm:$0xff] }
 0x12b   :  { %v1469_v11 = vadd.f32 %v1468_v35, %v1456_v5  ;;  %v3310_v35 = vor.u32 %v3655_v31, %v3307_v33  ;;  %v3675_v33 = vld [vmem:[%s5417_s5 + $0x50] sm:$0xff] }
 0x12d   :  { %v3691_v46 = vpop.eup %3690 }
 0x12e   :  { %v1538_v49 = vadd.f32 1.0, %v3691_v46  ;;  %2086 = vmatpush.bf16.msrb.mxu3 %v3334_v10  ;;  %v3649_v46 = vld [vmem:[%s5414_s3 + $0x184] sm:$0xf] }
 0x130   :  { %v1457_v51 = vpop.f32.mrf.mxu2  ;;  %3692 = vrcp.f32 %v1538_v49  ;;  %vm1575_vm8 = vweird.f32 %v1538_v49  ;;  %v1581_v6 = vand.u32 2147483648, %v1538_v49  ;;  %v1579_v9 = vand.u32 2147483647, %v1538_v49 }
 0x131   :  { %v1470_v53 = vpop.f32.mrf.mxu3 }
 0x132   :  { %v1582_v21 = vor.u32 1.1754944e-38, %v1581_v6  ;;  %vm1580_vm11 = vcmp.eq.f32.partialorder %v1579_v9, 8.507059e+37  ;;  %2087 = vmatpush.bf16.msrb.mxu3 %v3326_v32  ;;  %v3669_v32 = vld [vmem:[%s5417_s5 + $0x20] sm:$0xff] }
 0x136   :  { %v3693_v60 = vpop.eup %3692  ;;  %2088 = vmatpush.bf16.msrb.mxu3 %v3318_v24  ;;  %v3678_v24 = vld [vmem:[%s5417_s5 + $0x68] sm:$0xff] }
 0x137   :  { %v1571_v0 = vmul.f32 %v3693_v60, %v1538_v49  ;;  %vm1576_vm9 = vweird.f32 %v3693_v60  ;;  %v3286_v49 = vor.u32 %v3649_v46, %v3283_v47 }
 0x138   :  { %vm1577_vm10 = vmor %vm1575_vm8, %vm1576_vm9 }
 0x139   :  { %v1572_v4 = vsub.f32 1.0, %v1571_v0  ;;  %v1668_v0 = vld [vmem:[%s5415_s4] sm:$0x3] }
 0x13a   :  { %2089 = vmatpush.bf16.msrb.mxu3 %v3310_v35  ;;  %v1670_v23 = vperm.slane %v1668_v0, 0  ;;  %v1671_v3 = vperm.slane %v1668_v0, 1 }
 0x13b   :  { %v1573_v8 = vmul.f32 %v3693_v60, %v1572_v4 }
 0x13d   :  { %v1574_v20 = vadd.f32 %v3693_v60, %v1573_v8 }
 0x13e   :  { %2090 = vmatpush.bf16.msrb.mxu3 %v3302_v40 }
 0x13f   :  { %v1578_v18 = vsel %vm1577_vm10, %v3693_v60, %v1574_v20  ;;  %v3672_v20 = vld [vmem:[%s5417_s5 + $0x38] sm:$0xff] }
 0x140   :  { %v1481_v12 = vpop.f32.mrf.mxu0  ;;  %v1583_v19 = vsel %vm1580_vm11, %v1582_v21, %v1578_v18  ;;  %2270 = vmatpush.bf16.msra.mxu0 %v3672_v20  ;;  %v3667_v18 = vld [vmem:[%s5417_s5 + $0x10] sm:$0xff] }
 0x141   :  { %v1494_v15 = vpop.f32.mrf.mxu1  ;;  %v1482_v17 = vadd.f32 %v1481_v12, %v1469_v11  ;;  %v1602_v22 = vpack.c.bf16 %v1583_v19, %v1583_v19  ;;  %v3679_v19 = vld [vmem:[%s5417_s5 + $0x70] sm:$0xff] }
 0x142   :  { %2091 = vmatpush.bf16.msrb.mxu3 %v3294_v45  ;;  %2284 = vmatpush.bf16.msra.mxu1 %v3679_v19 }
 0x143   :  { %v1495_v25 = vadd.f32 %v1494_v15, %v1482_v17  ;;  %2028 = vmatmul.bf16.vlgmr.msra.gmra.mxu2 %v1602_v22  ;;  %v3670_v15 = vld [vmem:[%s5417_s5 + $0x28] sm:$0xff] }
 0x144   :  { %2271 = vmatpush.bf16.msra.mxu0 %v3671_v14 }
 0x146   :  { %2092 = vmatpush.bf16.msrb.mxu3 %v3286_v49  ;;  %2285 = vmatpush.bf16.msra.mxu1 %v3678_v24 }
 0x148   :  { %v1507_v26 = vpop.f32.mrf.mxu2  ;;  %v1483_v29 = vpop.f32.mrf.mxu0  ;;  %2272 = vmatpush.bf16.msra.mxu0 %v3670_v15 }
 0x149   :  { %v1508_v27 = vadd.f32 %v1507_v26, %v1495_v25  ;;  %v1520_v28 = vpop.f32.mrf.mxu3  ;;  %v1496_v30 = vpop.f32.mrf.mxu1  ;;  %v3665_v25 = vld [vmem:[%s5417_s5] sm:$0xff] }
 0x14a   :  { %v3677_v26 = vld [vmem:[%s5417_s5 + $0x60] sm:$0xff]  ;;  %v3676_v30 = vld [vmem:[%s5417_s5 + $0x58] sm:$0xff] }
 0x14b   :  { %v1521_v34 = vadd.f32 %v1520_v28, %v1508_v27  ;;  %2286 = vmatpush.bf16.msra.mxu1 %v3677_v26 }
 0x14c   :  { %2273 = vmatpush.bf16.msra.mxu0 %v3669_v32 }
 0x14d   :  { %v3086_v39 = vmul.f32 -1.442695, %v1521_v34  ;;  %v3674_v34 = vld [vmem:[%s5417_s5 + $0x48] sm:$0xff] }
 0x14f   :  { %3694 = vpow2.f32 %v3086_v39  ;;  %2287 = vmatpush.bf16.msra.mxu1 %v3676_v30 }
 0x150   :  { %v1509_v43 = vpop.f32.mrf.mxu2  ;;  %2274 = vmatpush.bf16.msra.mxu0 %v3668_v36 }
 0x151   :  { %v1522_v44 = vpop.f32.mrf.mxu3 }
 0x153   :  { %2080 = vmatmul.bf16.vlgmr.msrb.gmra.mxu2 %v1602_v22  ;;  %v3666_v22 = vld [vmem:[%s5417_s5 + $0x8] sm:$0xff]  ;;  %2288 = vmatpush.bf16.msra.mxu1 %v3675_v33 }
 0x154   :  { %2275 = vmatpush.bf16.msra.mxu0 %v3667_v18 }
 0x155   :  { %v3695_v48 = vpop.eup %3694 }
 0x156   :  { %v1539_v50 = vadd.f32 1.0, %v3695_v48 }
 0x157   :  { %2289 = vmatpush.bf16.msra.mxu1 %v3674_v34 }
 0x158   :  { %3696 = vrcp.f32 %v1539_v50  ;;  %v1596_v53 = vand.u32 2147483648, %v1539_v50  ;;  %v1594_v2 = vand.u32 2147483647, %v1539_v50  ;;  %vm1590_vm13 = vweird.f32 %v1539_v50  ;;  %2276 = vmatpush.bf16.msra.mxu0 %v3666_v22 }
 0x15a   :  { %v1597_v56 = vor.u32 1.1754944e-38, %v1596_v53  ;;  %vm1595_vm15 = vcmp.eq.f32.partialorder %v1594_v2, 8.507059e+37 }
 0x15b   :  { %2290 = vmatpush.bf16.msra.mxu1 %v3673_v38 }
 0x15c   :  { %2277 = vmatpush.bf16.msra.mxu0 %v3665_v25 }
 0x15e   :  { %v3697_v51 = vpop.eup %3696 }
 0x15f   :  { %v1586_v1 = vmul.f32 %v3697_v51, %v1539_v50  ;;  %vm1591_vm12 = vweird.f32 %v3697_v51 }
 0x160   :  { %vm1592_vm14 = vmor %vm1590_vm13, %vm1591_vm12 }
 0x161   :  { %v1587_v52 = vsub.f32 1.0, %v1586_v1 }
 0x163   :  { %v1588_v54 = vmul.f32 %v3697_v51, %v1587_v52 }
 0x164   :  { %v2003_v60 = vpop.f32.mrf.mxu0 }
 0x165   :  { %v1589_v55 = vadd.f32 %v3697_v51, %v1588_v54  ;;  %v2004_v4 = vadd.f32 %v2003_v60, %v1670_v23 }
 0x167   :  { %v1593_v57 = vsel %vm1592_vm14, %v3697_v51, %v1589_v55 }
 0x168   :  { %v1598_v58 = vsel %vm1595_vm15, %v1597_v56, %v1593_v57 }
 0x169   :  { %v1603_v59 = vpack.c.bf16 %v1598_v58, %v1598_v58 }
 0x16b   :  { %2041 = vmatmul.bf16.vlgmr.msra.gmra.mxu3 %v1603_v59 }
 0x16c   :  { %v2005_v61 = vpop.f32.mrf.mxu0 }
 0x17b   :  { %2093 = vmatmul.bf16.vlgmr.msrb.gmra.mxu3 %v1603_v59 }
 0x180   :  { %v2055_v62 = vpop.f32.mrf.mxu0 }
 0x181   :  { %v2056_v8 = vadd.f32 %v2055_v62, %v1671_v3  ;;  %v3681_v3 = vld [vmem:[%s5416_s6] ss:$0 sm:$0xff] }
 0x188   :  { %v2057_v63 = vpop.f32.mrf.mxu0  ;;  %v2016_v5 = vpop.f32.mrf.mxu1 }
 0x189   :  { %v2017_v6 = vadd.f32 %v2016_v5, %v2004_v4 }
 0x190   :  { %v2018_v7 = vpop.f32.mrf.mxu1 }
 0x191   :  { %v2296_v7 = vlaneseq }
 0x198   :  { %v2068_v9 = vpop.f32.mrf.mxu1 }
 0x199   :  { %v2069_v10 = vadd.f32 %v2068_v9, %v2056_v8  ;;  %v2297_v8 = vand.u32 127, %v2296_v7 }
 0x19b   :  { %vm2298_vm8 = vcmp.lt.s32.totalorder %v2297_v8, 3 }
 0x1a0   :  { %v2070_v11 = vpop.f32.mrf.mxu1 }
 0x1c6   :  { %v2029_v12 = vpop.f32.mrf.mxu2 }
 0x1c7   :  { %v2030_v27 = vadd.f32 %v2029_v12, %v2017_v6 }
 0x1ce   :  { %v2031_v13 = vpop.f32.mrf.mxu2 }
 0x1d6   :  { %v2081_v21 = vpop.f32.mrf.mxu2 }
 0x1d7   :  { %v2082_v40 = vadd.f32 %v2081_v21, %v2069_v10 }
 0x1de   :  { %v2083_v17 = vpop.f32.mrf.mxu2 }
 0x1ee   :  { %v2042_v28 = vpop.f32.mrf.mxu3 }
 0x1ef   :  { %v2043_v29 = vadd.f32 %v2042_v28, %v2030_v27 }
 0x1f1   :  { %v3343_v31 = vmul.f32 -1.442695, %v2043_v29 }
 0x1f3   :  { %3698 = vpow2.f32 %v3343_v31 }
 0x1f6   :  { %v2044_v35 = vpop.f32.mrf.mxu3 }
 0x1f9   :  { %v3699_v37 = vpop.eup %3698 }
 0x1fa   :  { %v2104_v39 = vadd.f32 1.0, %v3699_v37 }
 0x1fc   :  { %3700 = vrcp.f32 %v2104_v39  ;;  %v2117_v48 = vand.u32 2147483648, %v2104_v39  ;;  %v2115_v50 = vand.u32 2147483647, %v2104_v39  ;;  %vm2111_vm1 = vweird.f32 %v2104_v39 }
 0x1fe   :  { %v2094_v41 = vpop.f32.mrf.mxu3  ;;  %v2118_v53 = vor.u32 1.1754944e-38, %v2117_v48  ;;  %vm2116_vm3 = vcmp.eq.f32.partialorder %v2115_v50, 8.507059e+37 }
 0x1ff   :  { %v2095_v42 = vadd.f32 %v2094_v41, %v2082_v40 }
 0x201   :  { %v3344_v43 = vmul.f32 -1.442695, %v2095_v42 }
 0x202   :  { %v3701_v44 = vpop.eup %3700 }
 0x203   :  { %v2107_v45 = vmul.f32 %v3701_v44, %v2104_v39  ;;  %3702 = vpow2.f32 %v3344_v43  ;;  %vm2112_vm0 = vweird.f32 %v3701_v44 }
 0x204   :  { %vm2113_vm2 = vmor %vm2111_vm1, %vm2112_vm0 }
 0x205   :  { %v2108_v46 = vsub.f32 1.0, %v2107_v45 }
 0x206   :  { %v2096_v47 = vpop.f32.mrf.mxu3 }
 0x207   :  { %v2109_v49 = vmul.f32 %v3701_v44, %v2108_v46 }
 0x209   :  { %v3703_v51 = vpop.eup %3702  ;;  %v2110_v1 = vadd.f32 %v3701_v44, %v2109_v49 }
 0x20a   :  { %v2105_v52 = vadd.f32 1.0, %v3703_v51 }
 0x20b   :  { %v2114_v54 = vsel %vm2113_vm2, %v3701_v44, %v2110_v1 }
 0x20c   :  { %3704 = vrcp.f32 %v2105_v52  ;;  %v2119_v2 = vsel %vm2116_vm3, %v2118_v53, %v2114_v54  ;;  %v2132_v59 = vand.u32 2147483648, %v2105_v52  ;;  %v2130_v61 = vand.u32 2147483647, %v2105_v52 }
 0x20d   :  { %v2136_v55 = vpack.c.bf16 %v2119_v2, %v2119_v2  ;;  %vm2126_vm5 = vweird.f32 %v2105_v52 }
 0x20e   :  { %v2133_v63 = vor.u32 1.1754944e-38, %v2132_v59  ;;  %vm2131_vm7 = vcmp.eq.f32.partialorder %v2130_v61, 8.507059e+37 }
 0x20f   :  { %2278 = vmatmul.bf16.vlgmr.msra.gmra.mxu0 %v2136_v55 }
 0x212   :  { %v3705_v56 = vpop.eup %3704 }
 0x213   :  { %v2122_v57 = vmul.f32 %v3705_v56, %v2105_v52  ;;  %vm2127_vm4 = vweird.f32 %v3705_v56 }
 0x214   :  { %vm2128_vm6 = vmor %vm2126_vm5, %vm2127_vm4 }
 0x215   :  { %v2123_v58 = vsub.f32 1.0, %v2122_v57 }
 0x217   :  { %v2124_v60 = vmul.f32 %v3705_v56, %v2123_v58 }
 0x219   :  { %v2125_v62 = vadd.f32 %v3705_v56, %v2124_v60 }
 0x21b   :  { %v2129_v0 = vsel %vm2128_vm6, %v3705_v56, %v2125_v62 }
 0x21c   :  { %v2134_v23 = vsel %vm2131_vm7, %v2133_v63, %v2129_v0 }
 0x21d   :  { %v2137_v4 = vpack.c.bf16 %v2134_v23, %v2134_v23 }
 0x21f   :  { %2291 = vmatmul.bf16.vlgmr.msra.gmra.mxu1 %v2137_v4 }
 0x28c   :  { %v2279_v5 = vpop.f32.mrf.mxu0 }
 0x28d   :  { %v2280_v9 = vadd.f32 %v3681_v3, %v2279_v5 }
 0x294   :  { %v2281_v6 = vpop.f32.mrf.mxu0 }
 0x29c   :  { %v2292_v10 = vpop.f32.mrf.mxu1 }
 0x29d   :  { %v2293_v11 = vadd.f32 %v2292_v10, %v2280_v9 }
 0x29f   :  { %v2299_v12 = vsel %vm2298_vm8, %v2293_v11, -1e+30 }
 0x2a0   :  { %2300 = vmax.xlane.f32.xlu0 %v2299_v12 }
 0x2a4   :  { %v2294_v20 = vpop.f32.mrf.mxu1 }
 0x313   :  { %v2301_v13 = vpop.xlane.xlu0 %2300 }
 0x314   :  { %v2302_v14 = vsub.f32 %v2299_v12, %v2301_v13 }
 0x316   :  { %v2303_v15 = vmul.f32 1.442695, %v2302_v14 }
 0x318   :  { %3706 = vpow2.f32 %v2303_v15 }
 0x31e   :  { %v3707_v21 = vpop.eup %3706 }
 0x31f   :  { %2305 = vadd.xlane.f32.xlu0 %v3707_v21 }
 0x392   :  { %v2306_v32 = vpop.xlane.xlu0 %2305 }
 0x393   :  { %3708 = vlog2.f32 %v2306_v32 }
 0x399   :  { %v3709_v36 = vpop.eup %3708 }
 0x39a   :  { %v2308_v16 = vmul.f32 0.6931472, %v3709_v36 }
 0x39c   :  { %v2309_v17 = vsub.f32 %v2302_v14, %v2308_v16 }
 0x39e   :  { %2310 = vst [vmem:[%s5418_s7] sm:$0xff] %v2309_v17 }

</bundles_post_ra>
